<compile_context>
chip_gen: v6e
topology: v6e:2x2x1
jax: 0.10.0
libtpu: 0.0.40
codegen_flags: <defaults>
</compile_context>

<pallas_src>
import math

import jax
import jax.numpy as jnp
from jax import lax
from jax.experimental import pallas as pl
from jax.experimental.pallas import tpu as pltpu

# ---- model hyperparameters (small, but structurally BERT-like) ----
B = 2              # batch
S = 8              # sequence length
NTOK = B * S       # 16 flattened (batch*seq) rows = one bf16 sublane tile
H = 32             # hidden size
NUM_HEADS = 4
HEAD_DIM = H // NUM_HEADS
FFN = 64           # intermediate size
LAYERS = 2
VOCAB = 100
VOCAB_PAD = 128    # pad vocab to a full lane tile for the one-hot gather
NUM_CLASSES = 2
LANES = 128
LN_EPS = 1e-12

# ---- packed small-parameter buffer layout: one f32 (N_ROWS, 128) array ----
R_EMB_G, R_EMB_B = 0, 1
_PER_LAYER = 10
BQ, BK, BV, BO, LN1G, LN1B, B1, B2, LN2G, LN2B = range(_PER_LAYER)
R_BP = 2 + LAYERS * _PER_LAYER
R_BC = R_BP + 1
N_ROWS = R_BC + 1

_VMEM = pl.BlockSpec(memory_space=pltpu.MemorySpace.VMEM)


# --------------------------------- kernel ------------------------------------
def fused_backbone_kernel(ids_ref, wemb_ref, pos_ref, wqkv_ref, wo_ref,
                          w1_ref, w2_ref, wp_ref, wc_ref, vecs_ref, out_ref):
    f32, bf16 = jnp.float32, jnp.bfloat16

    def vec(row, n=H):
        # one packed-parameter row, first n lanes; (1, n) broadcasts over rows
        return vecs_ref[row:row + 1, :n]

    def layernorm(x, grow, brow):
        mu = jnp.mean(x, axis=-1, keepdims=True)
        var = jnp.mean(jnp.square(x - mu), axis=-1, keepdims=True)
        return (x - mu) * lax.rsqrt(var + LN_EPS) * vec(grow) + vec(brow)

    def gelu(x):
        # TODO(synk): exact erf-based GELU if matching an HF "gelu" checkpoint.
        c = math.sqrt(2.0 / math.pi)
        return 0.5 * x * (1.0 + jnp.tanh(c * (x + 0.044715 * x * x * x)))

    # ---- embeddings: (16,128) one-hot x (128,32) table on the MXU + LN ----
    ids = ids_ref[...]                                            # (NTOK, 1) i32
    lane_iota = lax.broadcasted_iota(jnp.int32, (NTOK, VOCAB_PAD), 1)
    onehot = (ids == lane_iota).astype(bf16)                      # (16, 128)
    emb = jnp.dot(onehot, wemb_ref[...], preferred_element_type=f32)
    emb = emb + pos_ref[...]                                      # (16, 32) f32
    x = layernorm(emb, R_EMB_G, R_EMB_B)

    # Block-diagonal mask over the flattened (B*S, B*S) score matrix so heads
    # never attend across the batch boundary (replaces batched 3D dots).
    # TODO(synk): also fold in an attention_mask for padded sequences.
    shift = S.bit_length() - 1                   # S is a power of two
    ri = lax.broadcasted_iota(jnp.int32, (NTOK, NTOK), 0) >> shift
    ci = lax.broadcasted_iota(jnp.int32, (NTOK, NTOK), 1) >> shift
    neg_mask = jnp.where(ri == ci, 0.0, -1e30).astype(f32)        # (16, 16)

    scale = 1.0 / math.sqrt(HEAD_DIM)
    for l in range(LAYERS):                      # static unroll over layers
        base = 2 + l * _PER_LAYER
        x_b = x.astype(bf16)                     # one cast per layer

        # fused full-width QKV: three (16,32)x(32,32) matmuls (N=32, not N=8)
        q = jnp.dot(x_b, wqkv_ref[l, 0], preferred_element_type=f32) + vec(base + BQ)
        k = jnp.dot(x_b, wqkv_ref[l, 1], preferred_element_type=f32) + vec(base + BK)
        v = jnp.dot(x_b, wqkv_ref[l, 2], preferred_element_type=f32) + vec(base + BV)

        ctx_heads = []
        for h in range(NUM_HEADS):
            sl = slice(h * HEAD_DIM, (h + 1) * HEAD_DIM)
            qh, kh, vh = q[:, sl], k[:, sl], v[:, sl]             # (16, 8) f32
            s = lax.dot_general(qh, kh, (((1,), (1,)), ((), ())),
                                preferred_element_type=f32)        # (16, 16)
            s = s * scale + neg_mask
            s = s - jnp.max(s, axis=-1, keepdims=True)
            p = jnp.exp(s)
            p = p * pl.reciprocal(jnp.sum(p, axis=-1, keepdims=True), approx=True)
            ctx_heads.append(jnp.dot(p, vh, preferred_element_type=f32))
        ctx = jnp.concatenate(ctx_heads, axis=-1).astype(bf16)    # (16, 32)

        # single fused output projection over all heads
        attn = jnp.dot(ctx, wo_ref[l], preferred_element_type=f32) + vec(base + BO)
        h1 = layernorm(x + attn, base + LN1G, base + LN1B)

        ff = jnp.dot(h1.astype(bf16), w1_ref[l], preferred_element_type=f32)
        ff = gelu(ff + vec(base + B1, FFN))
        ff = jnp.dot(ff.astype(bf16), w2_ref[l], preferred_element_type=f32)
        ff = ff + vec(base + B2)
        x = layernorm(h1 + ff, base + LN2G, base + LN2B)

    # ---- CLS rows (token 0 of each sequence) + pooler / classifier head ----
    cls = jnp.concatenate([x[b * S:b * S + 1, :] for b in range(B)], axis=0)  # (B, H)
    pooled = jnp.tanh(jnp.dot(cls.astype(bf16), wp_ref[...],
                              preferred_element_type=f32) + vec(R_BP))
    # wc is pre-padded to (H, 128): the logits row is already lane-dense
    logits_row = (jnp.dot(pooled.astype(bf16), wc_ref[...],
                          preferred_element_type=f32)
                  + vecs_ref[R_BC:R_BC + 1, :])                    # (B, 128)
    cls_row = jnp.concatenate([cls, jnp.zeros((B, LANES - H), f32)], axis=-1)
    # single lane-dense output slab: rows [0:B] logits, rows [B:2B] CLS hidden
    out_ref[...] = jnp.concatenate([logits_row, cls_row], axis=0)  # (2B, 128)


# ------------------------------ host-side glue --------------------------------
def init_params(key):
    bf16 = jnp.bfloat16

    def normal(k, shape, dtype=bf16, scale=0.02):
        return (scale * jax.random.normal(k, shape, jnp.float32)).astype(dtype)

    keys = iter(jax.random.split(key, 9))

    word_emb = jnp.zeros((VOCAB_PAD, H), bf16).at[:VOCAB].set(
        normal(next(keys), (VOCAB, H)))
    pos = normal(next(keys), (S, H), dtype=jnp.float32)
    pos_tiled = jnp.tile(pos, (B, 1))                              # (B*S, H) f32

    wqkv = normal(next(keys), (LAYERS, 3, H, H))                   # fused QKV
    wo = normal(next(keys), (LAYERS, H, H))
    w1 = normal(next(keys), (LAYERS, H, FFN))
    w2 = normal(next(keys), (LAYERS, FFN, H))
    wp = normal(next(keys), (H, H))
    wc = jnp.zeros((H, LANES), bf16).at[:, :NUM_CLASSES].set(
        normal(next(keys), (H, NUM_CLASSES)))                      # lane-padded

    # packed LN-scale / bias buffer: one lane-dense (N_ROWS, 128) f32 array
    vecs = jnp.zeros((N_ROWS, LANES), jnp.float32)
    vecs = vecs.at[R_EMB_G, :H].set(1.0)
    for l in range(LAYERS):
        base = 2 + l * _PER_LAYER
        vecs = vecs.at[base + LN1G, :H].set(1.0)
        vecs = vecs.at[base + LN2G, :H].set(1.0)
    # all biases / LN betas stay zero (deterministic synthetic weights)

    return dict(word_emb=word_emb, pos=pos_tiled, wqkv=wqkv, wo=wo,
                w1=w1, w2=w2, wp=wp, wc=wc, vecs=vecs)


def wrapped_backbone_forward(params, token_ids):
    """Returns (logits [B, NUM_CLASSES], last_hidden_cls [B, H])."""
    ids_col = token_ids.reshape(NTOK, 1).astype(jnp.int32)        # flat ids
    args = (ids_col, params['word_emb'], params['pos'], params['wqkv'],
            params['wo'], params['w1'], params['w2'], params['wp'],
            params['wc'], params['vecs'])

    out = pl.pallas_call(
        fused_backbone_kernel,
        out_shape=jax.ShapeDtypeStruct((2 * B, LANES), jnp.float32),
        in_specs=[_VMEM] * len(args),
        out_specs=_VMEM,
    )(*args)

    logits = out[:B, :NUM_CLASSES]          # outputs.logits
    cls = out[B:2 * B, :H]                  # hidden_states[-1][:, 0]
    return logits, cls


if __name__ == "__main__":
    key = jax.random.PRNGKey(0)
    k_param, k_ids = jax.random.split(key)
    params = init_params(k_param)
    token_ids = jax.random.randint(k_ids, (B, S), 0, VOCAB, dtype=jnp.int32)

    fwd = jax.jit(wrapped_backbone_forward)
    logits, pooler_output = fwd(params, token_ids)
    jax.block_until_ready((logits, pooler_output))

    assert logits.shape == (B, NUM_CLASSES)
    assert pooler_output.shape == (B, H)
    print("KERNEL_OK")
</pallas_src>

<mosaic_0001>
module attributes {stable_mosaic.version = 11 : i64} {
  func.func @fused_backbone_kernel(%arg0: memref<16x1xi32, #tpu.memory_space<vmem>>, %arg1: memref<128x32xbf16, #tpu.memory_space<vmem>>, %arg2: memref<16x32xf32, #tpu.memory_space<vmem>>, %arg3: memref<2x3x32x32xbf16, #tpu.memory_space<vmem>>, %arg4: memref<2x32x32xbf16, #tpu.memory_space<vmem>>, %arg5: memref<2x32x64xbf16, #tpu.memory_space<vmem>>, %arg6: memref<2x64x32xbf16, #tpu.memory_space<vmem>>, %arg7: memref<32x32xbf16, #tpu.memory_space<vmem>>, %arg8: memref<32x128xbf16, #tpu.memory_space<vmem>>, %arg9: memref<24x128xf32, #tpu.memory_space<vmem>>, %arg10: memref<4x128xf32, #tpu.memory_space<vmem>>) attributes {dimension_semantics = [], scalar_prefetch = 0 : i64, scratch_operands = 0 : i64, tpu.core_type = #tpu.core_type<tc>} {
    %c0 = arith.constant 0 : index
    %c0_0 = arith.constant 0 : index
    %0 = vector.load %arg0[%c0, %c0_0] : memref<16x1xi32, #tpu.memory_space<vmem>>, vector<16x1xi32>
    %1 = tpu.iota {dimensions = array<i32: 1>} : vector<16x128xi32>
    %2 = vector.broadcast %0 : vector<16x1xi32> to vector<16x128xi32>
    %3 = arith.cmpi eq, %2, %1 : vector<16x128xi32>
    %4 = arith.extui %3 : vector<16x128xi1> to vector<16x128xi32>
    %5 = arith.sitofp %4 : vector<16x128xi32> to vector<16x128xf32>
    %6 = arith.truncf %5 : vector<16x128xf32> to vector<16x128xbf16>
    %c0_1 = arith.constant 0 : index
    %c0_2 = arith.constant 0 : index
    %7 = vector.load %arg1[%c0_1, %c0_2] : memref<128x32xbf16, #tpu.memory_space<vmem>>, vector<128x32xbf16>
    %cst = arith.constant dense<0.000000e+00> : vector<16x32xf32>
    %8 = tpu.matmul %6, %7, %cst {dimension_numbers = #tpu.dot_dimension_numbers<[1], [0], [0], [1], [0, 0, 1, 1], [], []>} : vector<16x128xbf16>, vector<128x32xbf16>, vector<16x32xf32> -> vector<16x32xf32>
    %c0_3 = arith.constant 0 : index
    %c0_4 = arith.constant 0 : index
    %9 = vector.load %arg2[%c0_3, %c0_4] : memref<16x32xf32, #tpu.memory_space<vmem>>, vector<16x32xf32>
    %10 = arith.addf %8, %9 : vector<16x32xf32>
    %cst_5 = arith.constant dense<0.000000e+00> : vector<16xf32>
    %11 = vector.multi_reduction <add>, %10, %cst_5 [1] : vector<16x32xf32> to vector<16xf32>
    %12 = vector.shape_cast %11 : vector<16xf32> to vector<16x1xf32>
    %cst_6 = arith.constant 3.200000e+01 : f32
    %13 = vector.broadcast %cst_6 : f32 to vector<16x1xf32>
    %14 = arith.divf %12, %13 : vector<16x1xf32>
    %15 = vector.broadcast %14 : vector<16x1xf32> to vector<16x32xf32>
    %16 = arith.subf %10, %15 : vector<16x32xf32>
    %17 = arith.mulf %16, %16 : vector<16x32xf32>
    %cst_7 = arith.constant dense<0.000000e+00> : vector<16xf32>
    %18 = vector.multi_reduction <add>, %17, %cst_7 [1] : vector<16x32xf32> to vector<16xf32>
    %19 = vector.shape_cast %18 : vector<16xf32> to vector<16x1xf32>
    %cst_8 = arith.constant 3.200000e+01 : f32
    %20 = vector.broadcast %cst_8 : f32 to vector<16x1xf32>
    %21 = arith.divf %19, %20 : vector<16x1xf32>
    %22 = vector.broadcast %14 : vector<16x1xf32> to vector<16x32xf32>
    %23 = arith.subf %10, %22 : vector<16x32xf32>
    %cst_9 = arith.constant 9.99999996E-13 : f32
    %24 = vector.broadcast %cst_9 : f32 to vector<16x1xf32>
    %25 = arith.addf %21, %24 : vector<16x1xf32>
    %26 = math.rsqrt %25 : vector<16x1xf32>
    %27 = vector.broadcast %26 : vector<16x1xf32> to vector<16x32xf32>
    %28 = arith.mulf %23, %27 : vector<16x32xf32>
    %c0_10 = arith.constant 0 : index
    %c0_11 = arith.constant 0 : index
    %29 = vector.load %arg9[%c0_10, %c0_11] : memref<24x128xf32, #tpu.memory_space<vmem>>, vector<1x32xf32>
    %30 = vector.broadcast %29 : vector<1x32xf32> to vector<16x32xf32>
    %31 = arith.mulf %28, %30 : vector<16x32xf32>
    %c1 = arith.constant 1 : index
    %c0_12 = arith.constant 0 : index
    %32 = vector.load %arg9[%c1, %c0_12] : memref<24x128xf32, #tpu.memory_space<vmem>>, vector<1x32xf32>
    %33 = vector.broadcast %32 : vector<1x32xf32> to vector<16x32xf32>
    %34 = arith.addf %31, %33 : vector<16x32xf32>
    %35 = tpu.iota {dimensions = array<i32: 0>} : vector<16x16xi32>
    %c3_i32 = arith.constant 3 : i32
    %36 = vector.broadcast %c3_i32 : i32 to vector<16x16xi32>
    %37 = arith.shrsi %35, %36 : vector<16x16xi32>
    %38 = tpu.iota {dimensions = array<i32: 1>} : vector<16x16xi32>
    %c3_i32_13 = arith.constant 3 : i32
    %39 = vector.broadcast %c3_i32_13 : i32 to vector<16x16xi32>
    %40 = arith.shrsi %38, %39 : vector<16x16xi32>
    %41 = arith.cmpi eq, %37, %40 : vector<16x16xi32>
    %cst_14 = arith.constant 0.000000e+00 : f32
    %cst_15 = arith.constant -1.000000e+30 : f32
    %42 = vector.broadcast %cst_14 : f32 to vector<16x16xf32>
    %43 = vector.broadcast %cst_15 : f32 to vector<16x16xf32>
    %44 = arith.select %41, %42, %43 : vector<16x16xi1>, vector<16x16xf32>
    %45 = arith.truncf %34 : vector<16x32xf32> to vector<16x32xbf16>
    %c0_16 = arith.constant 0 : index
    %c0_17 = arith.constant 0 : index
    %c0_18 = arith.constant 0 : index
    %c0_19 = arith.constant 0 : index
    %46 = vector.load %arg3[%c0_16, %c0_17, %c0_18, %c0_19] : memref<2x3x32x32xbf16, #tpu.memory_space<vmem>>, vector<1x1x32x32xbf16>
    %47 = vector.shape_cast %46 : vector<1x1x32x32xbf16> to vector<32x32xbf16>
    %cst_20 = arith.constant dense<0.000000e+00> : vector<16x32xf32>
    %48 = tpu.matmul %45, %47, %cst_20 {dimension_numbers = #tpu.dot_dimension_numbers<[1], [0], [0], [1], [0, 0, 1, 1], [], []>} : vector<16x32xbf16>, vector<32x32xbf16>, vector<16x32xf32> -> vector<16x32xf32>
    %c2 = arith.constant 2 : index
    %c0_21 = arith.constant 0 : index
    %49 = vector.load %arg9[%c2, %c0_21] : memref<24x128xf32, #tpu.memory_space<vmem>>, vector<1x32xf32>
    %50 = vector.broadcast %49 : vector<1x32xf32> to vector<16x32xf32>
    %51 = arith.addf %48, %50 : vector<16x32xf32>
    %c0_22 = arith.constant 0 : index
    %c1_23 = arith.constant 1 : index
    %c0_24 = arith.constant 0 : index
    %c0_25 = arith.constant 0 : index
    %52 = vector.load %arg3[%c0_22, %c1_23, %c0_24, %c0_25] : memref<2x3x32x32xbf16, #tpu.memory_space<vmem>>, vector<1x1x32x32xbf16>
    %53 = vector.shape_cast %52 : vector<1x1x32x32xbf16> to vector<32x32xbf16>
    %cst_26 = arith.constant dense<0.000000e+00> : vector<16x32xf32>
    %54 = tpu.matmul %45, %53, %cst_26 {dimension_numbers = #tpu.dot_dimension_numbers<[1], [0], [0], [1], [0, 0, 1, 1], [], []>} : vector<16x32xbf16>, vector<32x32xbf16>, vector<16x32xf32> -> vector<16x32xf32>
    %c3 = arith.constant 3 : index
    %c0_27 = arith.constant 0 : index
    %55 = vector.load %arg9[%c3, %c0_27] : memref<24x128xf32, #tpu.memory_space<vmem>>, vector<1x32xf32>
    %56 = vector.broadcast %55 : vector<1x32xf32> to vector<16x32xf32>
    %57 = arith.addf %54, %56 : vector<16x32xf32>
    %c0_28 = arith.constant 0 : index
    %c2_29 = arith.constant 2 : index
    %c0_30 = arith.constant 0 : index
    %c0_31 = arith.constant 0 : index
    %58 = vector.load %arg3[%c0_28, %c2_29, %c0_30, %c0_31] : memref<2x3x32x32xbf16, #tpu.memory_space<vmem>>, vector<1x1x32x32xbf16>
    %59 = vector.shape_cast %58 : vector<1x1x32x32xbf16> to vector<32x32xbf16>
    %cst_32 = arith.constant dense<0.000000e+00> : vector<16x32xf32>
    %60 = tpu.matmul %45, %59, %cst_32 {dimension_numbers = #tpu.dot_dimension_numbers<[1], [0], [0], [1], [0, 0, 1, 1], [], []>} : vector<16x32xbf16>, vector<32x32xbf16>, vector<16x32xf32> -> vector<16x32xf32>
    %c4 = arith.constant 4 : index
    %c0_33 = arith.constant 0 : index
    %61 = vector.load %arg9[%c4, %c0_33] : memref<24x128xf32, #tpu.memory_space<vmem>>, vector<1x32xf32>
    %62 = vector.broadcast %61 : vector<1x32xf32> to vector<16x32xf32>
    %63 = arith.addf %60, %62 : vector<16x32xf32>
    %64 = vector.extract_strided_slice %51 {offsets = [0, 0], sizes = [16, 8], strides = [1, 1]} : vector<16x32xf32> to vector<16x8xf32>
    %65 = vector.extract_strided_slice %57 {offsets = [0, 0], sizes = [16, 8], strides = [1, 1]} : vector<16x32xf32> to vector<16x8xf32>
    %66 = vector.extract_strided_slice %63 {offsets = [0, 0], sizes = [16, 8], strides = [1, 1]} : vector<16x32xf32> to vector<16x8xf32>
    %cst_34 = arith.constant dense<0.000000e+00> : vector<16x16xf32>
    %67 = tpu.matmul %64, %65, %cst_34 {dimension_numbers = #tpu.dot_dimension_numbers<[1], [1], [0], [0], [0, 0, 1, 0], [], []>} : vector<16x8xf32>, vector<16x8xf32>, vector<16x16xf32> -> vector<16x16xf32>
    %cst_35 = arith.constant 0.353553385 : f32
    %68 = vector.broadcast %cst_35 : f32 to vector<16x16xf32>
    %69 = arith.mulf %67, %68 : vector<16x16xf32>
    %70 = arith.addf %69, %44 : vector<16x16xf32>
    %cst_36 = arith.constant dense<0xFF800000> : vector<16xf32>
    %71 = vector.multi_reduction <maximumf>, %70, %cst_36 [1] : vector<16x16xf32> to vector<16xf32>
    %72 = vector.shape_cast %71 : vector<16xf32> to vector<16x1xf32>
    %73 = vector.broadcast %72 : vector<16x1xf32> to vector<16x16xf32>
    %74 = arith.subf %70, %73 : vector<16x16xf32>
    %75 = math.exp %74 : vector<16x16xf32>
    %cst_37 = arith.constant dense<0.000000e+00> : vector<16xf32>
    %76 = vector.multi_reduction <add>, %75, %cst_37 [1] : vector<16x16xf32> to vector<16xf32>
    %77 = vector.shape_cast %76 : vector<16xf32> to vector<16x1xf32>
    %78 = tpu.reciprocal %77 {approx = true} : vector<16x1xf32> -> vector<16x1xf32>
    %79 = vector.broadcast %78 : vector<16x1xf32> to vector<16x16xf32>
    %80 = arith.mulf %75, %79 : vector<16x16xf32>
    %cst_38 = arith.constant dense<0.000000e+00> : vector<16x8xf32>
    %81 = tpu.matmul %80, %66, %cst_38 {dimension_numbers = #tpu.dot_dimension_numbers<[1], [0], [0], [1], [0, 0, 1, 1], [], []>} : vector<16x16xf32>, vector<16x8xf32>, vector<16x8xf32> -> vector<16x8xf32>
    %82 = vector.extract_strided_slice %51 {offsets = [0, 8], sizes = [16, 8], strides = [1, 1]} : vector<16x32xf32> to vector<16x8xf32>
    %83 = vector.extract_strided_slice %57 {offsets = [0, 8], sizes = [16, 8], strides = [1, 1]} : vector<16x32xf32> to vector<16x8xf32>
    %84 = vector.extract_strided_slice %63 {offsets = [0, 8], sizes = [16, 8], strides = [1, 1]} : vector<16x32xf32> to vector<16x8xf32>
    %cst_39 = arith.constant dense<0.000000e+00> : vector<16x16xf32>
    %85 = tpu.matmul %82, %83, %cst_39 {dimension_numbers = #tpu.dot_dimension_numbers<[1], [1], [0], [0], [0, 0, 1, 0], [], []>} : vector<16x8xf32>, vector<16x8xf32>, vector<16x16xf32> -> vector<16x16xf32>
    %cst_40 = arith.constant 0.353553385 : f32
    %86 = vector.broadcast %cst_40 : f32 to vector<16x16xf32>
    %87 = arith.mulf %85, %86 : vector<16x16xf32>
    %88 = arith.addf %87, %44 : vector<16x16xf32>
    %cst_41 = arith.constant dense<0xFF800000> : vector<16xf32>
    %89 = vector.multi_reduction <maximumf>, %88, %cst_41 [1] : vector<16x16xf32> to vector<16xf32>
    %90 = vector.shape_cast %89 : vector<16xf32> to vector<16x1xf32>
    %91 = vector.broadcast %90 : vector<16x1xf32> to vector<16x16xf32>
    %92 = arith.subf %88, %91 : vector<16x16xf32>
    %93 = math.exp %92 : vector<16x16xf32>
    %cst_42 = arith.constant dense<0.000000e+00> : vector<16xf32>
    %94 = vector.multi_reduction <add>, %93, %cst_42 [1] : vector<16x16xf32> to vector<16xf32>
    %95 = vector.shape_cast %94 : vector<16xf32> to vector<16x1xf32>
    %96 = tpu.reciprocal %95 {approx = true} : vector<16x1xf32> -> vector<16x1xf32>
    %97 = vector.broadcast %96 : vector<16x1xf32> to vector<16x16xf32>
    %98 = arith.mulf %93, %97 : vector<16x16xf32>
    %cst_43 = arith.constant dense<0.000000e+00> : vector<16x8xf32>
    %99 = tpu.matmul %98, %84, %cst_43 {dimension_numbers = #tpu.dot_dimension_numbers<[1], [0], [0], [1], [0, 0, 1, 1], [], []>} : vector<16x16xf32>, vector<16x8xf32>, vector<16x8xf32> -> vector<16x8xf32>
    %100 = vector.extract_strided_slice %51 {offsets = [0, 16], sizes = [16, 8], strides = [1, 1]} : vector<16x32xf32> to vector<16x8xf32>
    %101 = vector.extract_strided_slice %57 {offsets = [0, 16], sizes = [16, 8], strides = [1, 1]} : vector<16x32xf32> to vector<16x8xf32>
    %102 = vector.extract_strided_slice %63 {offsets = [0, 16], sizes = [16, 8], strides = [1, 1]} : vector<16x32xf32> to vector<16x8xf32>
    %cst_44 = arith.constant dense<0.000000e+00> : vector<16x16xf32>
    %103 = tpu.matmul %100, %101, %cst_44 {dimension_numbers = #tpu.dot_dimension_numbers<[1], [1], [0], [0], [0, 0, 1, 0], [], []>} : vector<16x8xf32>, vector<16x8xf32>, vector<16x16xf32> -> vector<16x16xf32>
    %cst_45 = arith.constant 0.353553385 : f32
    %104 = vector.broadcast %cst_45 : f32 to vector<16x16xf32>
    %105 = arith.mulf %103, %104 : vector<16x16xf32>
    %106 = arith.addf %105, %44 : vector<16x16xf32>
    %cst_46 = arith.constant dense<0xFF800000> : vector<16xf32>
    %107 = vector.multi_reduction <maximumf>, %106, %cst_46 [1] : vector<16x16xf32> to vector<16xf32>
    %108 = vector.shape_cast %107 : vector<16xf32> to vector<16x1xf32>
    %109 = vector.broadcast %108 : vector<16x1xf32> to vector<16x16xf32>
    %110 = arith.subf %106, %109 : vector<16x16xf32>
    %111 = math.exp %110 : vector<16x16xf32>
    %cst_47 = arith.constant dense<0.000000e+00> : vector<16xf32>
    %112 = vector.multi_reduction <add>, %111, %cst_47 [1] : vector<16x16xf32> to vector<16xf32>
    %113 = vector.shape_cast %112 : vector<16xf32> to vector<16x1xf32>
    %114 = tpu.reciprocal %113 {approx = true} : vector<16x1xf32> -> vector<16x1xf32>
    %115 = vector.broadcast %114 : vector<16x1xf32> to vector<16x16xf32>
    %116 = arith.mulf %111, %115 : vector<16x16xf32>
    %cst_48 = arith.constant dense<0.000000e+00> : vector<16x8xf32>
    %117 = tpu.matmul %116, %102, %cst_48 {dimension_numbers = #tpu.dot_dimension_numbers<[1], [0], [0], [1], [0, 0, 1, 1], [], []>} : vector<16x16xf32>, vector<16x8xf32>, vector<16x8xf32> -> vector<16x8xf32>
    %118 = vector.extract_strided_slice %51 {offsets = [0, 24], sizes = [16, 8], strides = [1, 1]} : vector<16x32xf32> to vector<16x8xf32>
    %119 = vector.extract_strided_slice %57 {offsets = [0, 24], sizes = [16, 8], strides = [1, 1]} : vector<16x32xf32> to vector<16x8xf32>
    %120 = vector.extract_strided_slice %63 {offsets = [0, 24], sizes = [16, 8], strides = [1, 1]} : vector<16x32xf32> to vector<16x8xf32>
    %cst_49 = arith.constant dense<0.000000e+00> : vector<16x16xf32>
    %121 = tpu.matmul %118, %119, %cst_49 {dimension_numbers = #tpu.dot_dimension_numbers<[1], [1], [0], [0], [0, 0, 1, 0], [], []>} : vector<16x8xf32>, vector<16x8xf32>, vector<16x16xf32> -> vector<16x16xf32>
    %cst_50 = arith.constant 0.353553385 : f32
    %122 = vector.broadcast %cst_50 : f32 to vector<16x16xf32>
    %123 = arith.mulf %121, %122 : vector<16x16xf32>
    %124 = arith.addf %123, %44 : vector<16x16xf32>
    %cst_51 = arith.constant dense<0xFF800000> : vector<16xf32>
    %125 = vector.multi_reduction <maximumf>, %124, %cst_51 [1] : vector<16x16xf32> to vector<16xf32>
    %126 = vector.shape_cast %125 : vector<16xf32> to vector<16x1xf32>
    %127 = vector.broadcast %126 : vector<16x1xf32> to vector<16x16xf32>
    %128 = arith.subf %124, %127 : vector<16x16xf32>
    %129 = math.exp %128 : vector<16x16xf32>
    %cst_52 = arith.constant dense<0.000000e+00> : vector<16xf32>
    %130 = vector.multi_reduction <add>, %129, %cst_52 [1] : vector<16x16xf32> to vector<16xf32>
    %131 = vector.shape_cast %130 : vector<16xf32> to vector<16x1xf32>
    %132 = tpu.reciprocal %131 {approx = true} : vector<16x1xf32> -> vector<16x1xf32>
    %133 = vector.broadcast %132 : vector<16x1xf32> to vector<16x16xf32>
    %134 = arith.mulf %129, %133 : vector<16x16xf32>
    %cst_53 = arith.constant dense<0.000000e+00> : vector<16x8xf32>
    %135 = tpu.matmul %134, %120, %cst_53 {dimension_numbers = #tpu.dot_dimension_numbers<[1], [0], [0], [1], [0, 0, 1, 1], [], []>} : vector<16x16xf32>, vector<16x8xf32>, vector<16x8xf32> -> vector<16x8xf32>
    %136 = tpu.concatenate %81, %99, %117, %135 in 1 : vector<16x8xf32>, vector<16x8xf32>, vector<16x8xf32>, vector<16x8xf32> -> vector<16x32xf32>
    %137 = arith.truncf %136 : vector<16x32xf32> to vector<16x32xbf16>
    %c0_54 = arith.constant 0 : index
    %c0_55 = arith.constant 0 : index
    %c0_56 = arith.constant 0 : index
    %138 = vector.load %arg4[%c0_54, %c0_55, %c0_56] : memref<2x32x32xbf16, #tpu.memory_space<vmem>>, vector<1x32x32xbf16>
    %139 = vector.shape_cast %138 : vector<1x32x32xbf16> to vector<32x32xbf16>
    %cst_57 = arith.constant dense<0.000000e+00> : vector<16x32xf32>
    %140 = tpu.matmul %137, %139, %cst_57 {dimension_numbers = #tpu.dot_dimension_numbers<[1], [0], [0], [1], [0, 0, 1, 1], [], []>} : vector<16x32xbf16>, vector<32x32xbf16>, vector<16x32xf32> -> vector<16x32xf32>
    %c5 = arith.constant 5 : index
    %c0_58 = arith.constant 0 : index
    %141 = vector.load %arg9[%c5, %c0_58] : memref<24x128xf32, #tpu.memory_space<vmem>>, vector<1x32xf32>
    %142 = vector.broadcast %141 : vector<1x32xf32> to vector<16x32xf32>
    %143 = arith.addf %140, %142 : vector<16x32xf32>
    %144 = arith.addf %34, %143 : vector<16x32xf32>
    %cst_59 = arith.constant dense<0.000000e+00> : vector<16xf32>
    %145 = vector.multi_reduction <add>, %144, %cst_59 [1] : vector<16x32xf32> to vector<16xf32>
    %146 = vector.shape_cast %145 : vector<16xf32> to vector<16x1xf32>
    %cst_60 = arith.constant 3.200000e+01 : f32
    %147 = vector.broadcast %cst_60 : f32 to vector<16x1xf32>
    %148 = arith.divf %146, %147 : vector<16x1xf32>
    %149 = vector.broadcast %148 : vector<16x1xf32> to vector<16x32xf32>
    %150 = arith.subf %144, %149 : vector<16x32xf32>
    %151 = arith.mulf %150, %150 : vector<16x32xf32>
    %cst_61 = arith.constant dense<0.000000e+00> : vector<16xf32>
    %152 = vector.multi_reduction <add>, %151, %cst_61 [1] : vector<16x32xf32> to vector<16xf32>
    %153 = vector.shape_cast %152 : vector<16xf32> to vector<16x1xf32>
    %cst_62 = arith.constant 3.200000e+01 : f32
    %154 = vector.broadcast %cst_62 : f32 to vector<16x1xf32>
    %155 = arith.divf %153, %154 : vector<16x1xf32>
    %156 = vector.broadcast %148 : vector<16x1xf32> to vector<16x32xf32>
    %157 = arith.subf %144, %156 : vector<16x32xf32>
    %cst_63 = arith.constant 9.99999996E-13 : f32
    %158 = vector.broadcast %cst_63 : f32 to vector<16x1xf32>
    %159 = arith.addf %155, %158 : vector<16x1xf32>
    %160 = math.rsqrt %159 : vector<16x1xf32>
    %161 = vector.broadcast %160 : vector<16x1xf32> to vector<16x32xf32>
    %162 = arith.mulf %157, %161 : vector<16x32xf32>
    %c6 = arith.constant 6 : index
    %c0_64 = arith.constant 0 : index
    %163 = vector.load %arg9[%c6, %c0_64] : memref<24x128xf32, #tpu.memory_space<vmem>>, vector<1x32xf32>
    %164 = vector.broadcast %163 : vector<1x32xf32> to vector<16x32xf32>
    %165 = arith.mulf %162, %164 : vector<16x32xf32>
    %c7 = arith.constant 7 : index
    %c0_65 = arith.constant 0 : index
    %166 = vector.load %arg9[%c7, %c0_65] : memref<24x128xf32, #tpu.memory_space<vmem>>, vector<1x32xf32>
    %167 = vector.broadcast %166 : vector<1x32xf32> to vector<16x32xf32>
    %168 = arith.addf %165, %167 : vector<16x32xf32>
    %169 = arith.truncf %168 : vector<16x32xf32> to vector<16x32xbf16>
    %c0_66 = arith.constant 0 : index
    %c0_67 = arith.constant 0 : index
    %c0_68 = arith.constant 0 : index
    %170 = vector.load %arg5[%c0_66, %c0_67, %c0_68] : memref<2x32x64xbf16, #tpu.memory_space<vmem>>, vector<1x32x64xbf16>
    %171 = vector.shape_cast %170 : vector<1x32x64xbf16> to vector<32x64xbf16>
    %cst_69 = arith.constant dense<0.000000e+00> : vector<16x64xf32>
    %172 = tpu.matmul %169, %171, %cst_69 {dimension_numbers = #tpu.dot_dimension_numbers<[1], [0], [0], [1], [0, 0, 1, 1], [], []>} : vector<16x32xbf16>, vector<32x64xbf16>, vector<16x64xf32> -> vector<16x64xf32>
    %c8 = arith.constant 8 : index
    %c0_70 = arith.constant 0 : index
    %173 = vector.load %arg9[%c8, %c0_70] : memref<24x128xf32, #tpu.memory_space<vmem>>, vector<1x64xf32>
    %174 = vector.broadcast %173 : vector<1x64xf32> to vector<16x64xf32>
    %175 = arith.addf %172, %174 : vector<16x64xf32>
    %cst_71 = arith.constant 5.000000e-01 : f32
    %176 = vector.broadcast %cst_71 : f32 to vector<16x64xf32>
    %177 = arith.mulf %176, %175 : vector<16x64xf32>
    %cst_72 = arith.constant 4.471500e-02 : f32
    %178 = vector.broadcast %cst_72 : f32 to vector<16x64xf32>
    %179 = arith.mulf %178, %175 : vector<16x64xf32>
    %180 = arith.mulf %179, %175 : vector<16x64xf32>
    %181 = arith.mulf %180, %175 : vector<16x64xf32>
    %182 = arith.addf %175, %181 : vector<16x64xf32>
    %cst_73 = arith.constant 0.797884583 : f32
    %183 = vector.broadcast %cst_73 : f32 to vector<16x64xf32>
    %184 = arith.mulf %183, %182 : vector<16x64xf32>
    %185 = math.tanh %184 : vector<16x64xf32>
    %cst_74 = arith.constant 1.000000e+00 : f32
    %186 = vector.broadcast %cst_74 : f32 to vector<16x64xf32>
    %187 = arith.addf %186, %185 : vector<16x64xf32>
    %188 = arith.mulf %177, %187 : vector<16x64xf32>
    %189 = arith.truncf %188 : vector<16x64xf32> to vector<16x64xbf16>
    %c0_75 = arith.constant 0 : index
    %c0_76 = arith.constant 0 : index
    %c0_77 = arith.constant 0 : index
    %190 = vector.load %arg6[%c0_75, %c0_76, %c0_77] : memref<2x64x32xbf16, #tpu.memory_space<vmem>>, vector<1x64x32xbf16>
    %191 = vector.shape_cast %190 : vector<1x64x32xbf16> to vector<64x32xbf16>
    %cst_78 = arith.constant dense<0.000000e+00> : vector<16x32xf32>
    %192 = tpu.matmul %189, %191, %cst_78 {dimension_numbers = #tpu.dot_dimension_numbers<[1], [0], [0], [1], [0, 0, 1, 1], [], []>} : vector<16x64xbf16>, vector<64x32xbf16>, vector<16x32xf32> -> vector<16x32xf32>
    %c9 = arith.constant 9 : index
    %c0_79 = arith.constant 0 : index
    %193 = vector.load %arg9[%c9, %c0_79] : memref<24x128xf32, #tpu.memory_space<vmem>>, vector<1x32xf32>
    %194 = vector.broadcast %193 : vector<1x32xf32> to vector<16x32xf32>
    %195 = arith.addf %192, %194 : vector<16x32xf32>
    %196 = arith.addf %168, %195 : vector<16x32xf32>
    %cst_80 = arith.constant dense<0.000000e+00> : vector<16xf32>
    %197 = vector.multi_reduction <add>, %196, %cst_80 [1] : vector<16x32xf32> to vector<16xf32>
    %198 = vector.shape_cast %197 : vector<16xf32> to vector<16x1xf32>
    %cst_81 = arith.constant 3.200000e+01 : f32
    %199 = vector.broadcast %cst_81 : f32 to vector<16x1xf32>
    %200 = arith.divf %198, %199 : vector<16x1xf32>
    %201 = vector.broadcast %200 : vector<16x1xf32> to vector<16x32xf32>
    %202 = arith.subf %196, %201 : vector<16x32xf32>
    %203 = arith.mulf %202, %202 : vector<16x32xf32>
    %cst_82 = arith.constant dense<0.000000e+00> : vector<16xf32>
    %204 = vector.multi_reduction <add>, %203, %cst_82 [1] : vector<16x32xf32> to vector<16xf32>
    %205 = vector.shape_cast %204 : vector<16xf32> to vector<16x1xf32>
    %cst_83 = arith.constant 3.200000e+01 : f32
    %206 = vector.broadcast %cst_83 : f32 to vector<16x1xf32>
    %207 = arith.divf %205, %206 : vector<16x1xf32>
    %208 = vector.broadcast %200 : vector<16x1xf32> to vector<16x32xf32>
    %209 = arith.subf %196, %208 : vector<16x32xf32>
    %cst_84 = arith.constant 9.99999996E-13 : f32
    %210 = vector.broadcast %cst_84 : f32 to vector<16x1xf32>
    %211 = arith.addf %207, %210 : vector<16x1xf32>
    %212 = math.rsqrt %211 : vector<16x1xf32>
    %213 = vector.broadcast %212 : vector<16x1xf32> to vector<16x32xf32>
    %214 = arith.mulf %209, %213 : vector<16x32xf32>
    %c10 = arith.constant 10 : index
    %c0_85 = arith.constant 0 : index
    %215 = vector.load %arg9[%c10, %c0_85] : memref<24x128xf32, #tpu.memory_space<vmem>>, vector<1x32xf32>
    %216 = vector.broadcast %215 : vector<1x32xf32> to vector<16x32xf32>
    %217 = arith.mulf %214, %216 : vector<16x32xf32>
    %c11 = arith.constant 11 : index
    %c0_86 = arith.constant 0 : index
    %218 = vector.load %arg9[%c11, %c0_86] : memref<24x128xf32, #tpu.memory_space<vmem>>, vector<1x32xf32>
    %219 = vector.broadcast %218 : vector<1x32xf32> to vector<16x32xf32>
    %220 = arith.addf %217, %219 : vector<16x32xf32>
    %221 = arith.truncf %220 : vector<16x32xf32> to vector<16x32xbf16>
    %c1_87 = arith.constant 1 : index
    %c0_88 = arith.constant 0 : index
    %c0_89 = arith.constant 0 : index
    %c0_90 = arith.constant 0 : index
    %222 = vector.load %arg3[%c1_87, %c0_88, %c0_89, %c0_90] : memref<2x3x32x32xbf16, #tpu.memory_space<vmem>>, vector<1x1x32x32xbf16>
    %223 = vector.shape_cast %222 : vector<1x1x32x32xbf16> to vector<32x32xbf16>
    %cst_91 = arith.constant dense<0.000000e+00> : vector<16x32xf32>
    %224 = tpu.matmul %221, %223, %cst_91 {dimension_numbers = #tpu.dot_dimension_numbers<[1], [0], [0], [1], [0, 0, 1, 1], [], []>} : vector<16x32xbf16>, vector<32x32xbf16>, vector<16x32xf32> -> vector<16x32xf32>
    %c12 = arith.constant 12 : index
    %c0_92 = arith.constant 0 : index
    %225 = vector.load %arg9[%c12, %c0_92] : memref<24x128xf32, #tpu.memory_space<vmem>>, vector<1x32xf32>
    %226 = vector.broadcast %225 : vector<1x32xf32> to vector<16x32xf32>
    %227 = arith.addf %224, %226 : vector<16x32xf32>
    %c1_93 = arith.constant 1 : index
    %c1_94 = arith.constant 1 : index
    %c0_95 = arith.constant 0 : index
    %c0_96 = arith.constant 0 : index
    %228 = vector.load %arg3[%c1_93, %c1_94, %c0_95, %c0_96] : memref<2x3x32x32xbf16, #tpu.memory_space<vmem>>, vector<1x1x32x32xbf16>
    %229 = vector.shape_cast %228 : vector<1x1x32x32xbf16> to vector<32x32xbf16>
    %cst_97 = arith.constant dense<0.000000e+00> : vector<16x32xf32>
    %230 = tpu.matmul %221, %229, %cst_97 {dimension_numbers = #tpu.dot_dimension_numbers<[1], [0], [0], [1], [0, 0, 1, 1], [], []>} : vector<16x32xbf16>, vector<32x32xbf16>, vector<16x32xf32> -> vector<16x32xf32>
    %c13 = arith.constant 13 : index
    %c0_98 = arith.constant 0 : index
    %231 = vector.load %arg9[%c13, %c0_98] : memref<24x128xf32, #tpu.memory_space<vmem>>, vector<1x32xf32>
    %232 = vector.broadcast %231 : vector<1x32xf32> to vector<16x32xf32>
    %233 = arith.addf %230, %232 : vector<16x32xf32>
    %c1_99 = arith.constant 1 : index
    %c2_100 = arith.constant 2 : index
    %c0_101 = arith.constant 0 : index
    %c0_102 = arith.constant 0 : index
    %234 = vector.load %arg3[%c1_99, %c2_100, %c0_101, %c0_102] : memref<2x3x32x32xbf16, #tpu.memory_space<vmem>>, vector<1x1x32x32xbf16>
    %235 = vector.shape_cast %234 : vector<1x1x32x32xbf16> to vector<32x32xbf16>
    %cst_103 = arith.constant dense<0.000000e+00> : vector<16x32xf32>
    %236 = tpu.matmul %221, %235, %cst_103 {dimension_numbers = #tpu.dot_dimension_numbers<[1], [0], [0], [1], [0, 0, 1, 1], [], []>} : vector<16x32xbf16>, vector<32x32xbf16>, vector<16x32xf32> -> vector<16x32xf32>
    %c14 = arith.constant 14 : index
    %c0_104 = arith.constant 0 : index
    %237 = vector.load %arg9[%c14, %c0_104] : memref<24x128xf32, #tpu.memory_space<vmem>>, vector<1x32xf32>
    %238 = vector.broadcast %237 : vector<1x32xf32> to vector<16x32xf32>
    %239 = arith.addf %236, %238 : vector<16x32xf32>
    %240 = vector.extract_strided_slice %227 {offsets = [0, 0], sizes = [16, 8], strides = [1, 1]} : vector<16x32xf32> to vector<16x8xf32>
    %241 = vector.extract_strided_slice %233 {offsets = [0, 0], sizes = [16, 8], strides = [1, 1]} : vector<16x32xf32> to vector<16x8xf32>
    %242 = vector.extract_strided_slice %239 {offsets = [0, 0], sizes = [16, 8], strides = [1, 1]} : vector<16x32xf32> to vector<16x8xf32>
    %cst_105 = arith.constant dense<0.000000e+00> : vector<16x16xf32>
    %243 = tpu.matmul %240, %241, %cst_105 {dimension_numbers = #tpu.dot_dimension_numbers<[1], [1], [0], [0], [0, 0, 1, 0], [], []>} : vector<16x8xf32>, vector<16x8xf32>, vector<16x16xf32> -> vector<16x16xf32>
    %cst_106 = arith.constant 0.353553385 : f32
    %244 = vector.broadcast %cst_106 : f32 to vector<16x16xf32>
    %245 = arith.mulf %243, %244 : vector<16x16xf32>
    %246 = arith.addf %245, %44 : vector<16x16xf32>
    %cst_107 = arith.constant dense<0xFF800000> : vector<16xf32>
    %247 = vector.multi_reduction <maximumf>, %246, %cst_107 [1] : vector<16x16xf32> to vector<16xf32>
    %248 = vector.shape_cast %247 : vector<16xf32> to vector<16x1xf32>
    %249 = vector.broadcast %248 : vector<16x1xf32> to vector<16x16xf32>
    %250 = arith.subf %246, %249 : vector<16x16xf32>
    %251 = math.exp %250 : vector<16x16xf32>
    %cst_108 = arith.constant dense<0.000000e+00> : vector<16xf32>
    %252 = vector.multi_reduction <add>, %251, %cst_108 [1] : vector<16x16xf32> to vector<16xf32>
    %253 = vector.shape_cast %252 : vector<16xf32> to vector<16x1xf32>
    %254 = tpu.reciprocal %253 {approx = true} : vector<16x1xf32> -> vector<16x1xf32>
    %255 = vector.broadcast %254 : vector<16x1xf32> to vector<16x16xf32>
    %256 = arith.mulf %251, %255 : vector<16x16xf32>
    %cst_109 = arith.constant dense<0.000000e+00> : vector<16x8xf32>
    %257 = tpu.matmul %256, %242, %cst_109 {dimension_numbers = #tpu.dot_dimension_numbers<[1], [0], [0], [1], [0, 0, 1, 1], [], []>} : vector<16x16xf32>, vector<16x8xf32>, vector<16x8xf32> -> vector<16x8xf32>
    %258 = vector.extract_strided_slice %227 {offsets = [0, 8], sizes = [16, 8], strides = [1, 1]} : vector<16x32xf32> to vector<16x8xf32>
    %259 = vector.extract_strided_slice %233 {offsets = [0, 8], sizes = [16, 8], strides = [1, 1]} : vector<16x32xf32> to vector<16x8xf32>
    %260 = vector.extract_strided_slice %239 {offsets = [0, 8], sizes = [16, 8], strides = [1, 1]} : vector<16x32xf32> to vector<16x8xf32>
    %cst_110 = arith.constant dense<0.000000e+00> : vector<16x16xf32>
    %261 = tpu.matmul %258, %259, %cst_110 {dimension_numbers = #tpu.dot_dimension_numbers<[1], [1], [0], [0], [0, 0, 1, 0], [], []>} : vector<16x8xf32>, vector<16x8xf32>, vector<16x16xf32> -> vector<16x16xf32>
    %cst_111 = arith.constant 0.353553385 : f32
    %262 = vector.broadcast %cst_111 : f32 to vector<16x16xf32>
    %263 = arith.mulf %261, %262 : vector<16x16xf32>
    %264 = arith.addf %263, %44 : vector<16x16xf32>
    %cst_112 = arith.constant dense<0xFF800000> : vector<16xf32>
    %265 = vector.multi_reduction <maximumf>, %264, %cst_112 [1] : vector<16x16xf32> to vector<16xf32>
    %266 = vector.shape_cast %265 : vector<16xf32> to vector<16x1xf32>
    %267 = vector.broadcast %266 : vector<16x1xf32> to vector<16x16xf32>
    %268 = arith.subf %264, %267 : vector<16x16xf32>
    %269 = math.exp %268 : vector<16x16xf32>
    %cst_113 = arith.constant dense<0.000000e+00> : vector<16xf32>
    %270 = vector.multi_reduction <add>, %269, %cst_113 [1] : vector<16x16xf32> to vector<16xf32>
    %271 = vector.shape_cast %270 : vector<16xf32> to vector<16x1xf32>
    %272 = tpu.reciprocal %271 {approx = true} : vector<16x1xf32> -> vector<16x1xf32>
    %273 = vector.broadcast %272 : vector<16x1xf32> to vector<16x16xf32>
    %274 = arith.mulf %269, %273 : vector<16x16xf32>
    %cst_114 = arith.constant dense<0.000000e+00> : vector<16x8xf32>
    %275 = tpu.matmul %274, %260, %cst_114 {dimension_numbers = #tpu.dot_dimension_numbers<[1], [0], [0], [1], [0, 0, 1, 1], [], []>} : vector<16x16xf32>, vector<16x8xf32>, vector<16x8xf32> -> vector<16x8xf32>
    %276 = vector.extract_strided_slice %227 {offsets = [0, 16], sizes = [16, 8], strides = [1, 1]} : vector<16x32xf32> to vector<16x8xf32>
    %277 = vector.extract_strided_slice %233 {offsets = [0, 16], sizes = [16, 8], strides = [1, 1]} : vector<16x32xf32> to vector<16x8xf32>
    %278 = vector.extract_strided_slice %239 {offsets = [0, 16], sizes = [16, 8], strides = [1, 1]} : vector<16x32xf32> to vector<16x8xf32>
    %cst_115 = arith.constant dense<0.000000e+00> : vector<16x16xf32>
    %279 = tpu.matmul %276, %277, %cst_115 {dimension_numbers = #tpu.dot_dimension_numbers<[1], [1], [0], [0], [0, 0, 1, 0], [], []>} : vector<16x8xf32>, vector<16x8xf32>, vector<16x16xf32> -> vector<16x16xf32>
    %cst_116 = arith.constant 0.353553385 : f32
    %280 = vector.broadcast %cst_116 : f32 to vector<16x16xf32>
    %281 = arith.mulf %279, %280 : vector<16x16xf32>
    %282 = arith.addf %281, %44 : vector<16x16xf32>
    %cst_117 = arith.constant dense<0xFF800000> : vector<16xf32>
    %283 = vector.multi_reduction <maximumf>, %282, %cst_117 [1] : vector<16x16xf32> to vector<16xf32>
    %284 = vector.shape_cast %283 : vector<16xf32> to vector<16x1xf32>
    %285 = vector.broadcast %284 : vector<16x1xf32> to vector<16x16xf32>
    %286 = arith.subf %282, %285 : vector<16x16xf32>
    %287 = math.exp %286 : vector<16x16xf32>
    %cst_118 = arith.constant dense<0.000000e+00> : vector<16xf32>
    %288 = vector.multi_reduction <add>, %287, %cst_118 [1] : vector<16x16xf32> to vector<16xf32>
    %289 = vector.shape_cast %288 : vector<16xf32> to vector<16x1xf32>
    %290 = tpu.reciprocal %289 {approx = true} : vector<16x1xf32> -> vector<16x1xf32>
    %291 = vector.broadcast %290 : vector<16x1xf32> to vector<16x16xf32>
    %292 = arith.mulf %287, %291 : vector<16x16xf32>
    %cst_119 = arith.constant dense<0.000000e+00> : vector<16x8xf32>
    %293 = tpu.matmul %292, %278, %cst_119 {dimension_numbers = #tpu.dot_dimension_numbers<[1], [0], [0], [1], [0, 0, 1, 1], [], []>} : vector<16x16xf32>, vector<16x8xf32>, vector<16x8xf32> -> vector<16x8xf32>
    %294 = vector.extract_strided_slice %227 {offsets = [0, 24], sizes = [16, 8], strides = [1, 1]} : vector<16x32xf32> to vector<16x8xf32>
    %295 = vector.extract_strided_slice %233 {offsets = [0, 24], sizes = [16, 8], strides = [1, 1]} : vector<16x32xf32> to vector<16x8xf32>
    %296 = vector.extract_strided_slice %239 {offsets = [0, 24], sizes = [16, 8], strides = [1, 1]} : vector<16x32xf32> to vector<16x8xf32>
    %cst_120 = arith.constant dense<0.000000e+00> : vector<16x16xf32>
    %297 = tpu.matmul %294, %295, %cst_120 {dimension_numbers = #tpu.dot_dimension_numbers<[1], [1], [0], [0], [0, 0, 1, 0], [], []>} : vector<16x8xf32>, vector<16x8xf32>, vector<16x16xf32> -> vector<16x16xf32>
    %cst_121 = arith.constant 0.353553385 : f32
    %298 = vector.broadcast %cst_121 : f32 to vector<16x16xf32>
    %299 = arith.mulf %297, %298 : vector<16x16xf32>
    %300 = arith.addf %299, %44 : vector<16x16xf32>
    %cst_122 = arith.constant dense<0xFF800000> : vector<16xf32>
    %301 = vector.multi_reduction <maximumf>, %300, %cst_122 [1] : vector<16x16xf32> to vector<16xf32>
    %302 = vector.shape_cast %301 : vector<16xf32> to vector<16x1xf32>
    %303 = vector.broadcast %302 : vector<16x1xf32> to vector<16x16xf32>
    %304 = arith.subf %300, %303 : vector<16x16xf32>
    %305 = math.exp %304 : vector<16x16xf32>
    %cst_123 = arith.constant dense<0.000000e+00> : vector<16xf32>
    %306 = vector.multi_reduction <add>, %305, %cst_123 [1] : vector<16x16xf32> to vector<16xf32>
    %307 = vector.shape_cast %306 : vector<16xf32> to vector<16x1xf32>
    %308 = tpu.reciprocal %307 {approx = true} : vector<16x1xf32> -> vector<16x1xf32>
    %309 = vector.broadcast %308 : vector<16x1xf32> to vector<16x16xf32>
    %310 = arith.mulf %305, %309 : vector<16x16xf32>
    %cst_124 = arith.constant dense<0.000000e+00> : vector<16x8xf32>
    %311 = tpu.matmul %310, %296, %cst_124 {dimension_numbers = #tpu.dot_dimension_numbers<[1], [0], [0], [1], [0, 0, 1, 1], [], []>} : vector<16x16xf32>, vector<16x8xf32>, vector<16x8xf32> -> vector<16x8xf32>
    %312 = tpu.concatenate %257, %275, %293, %311 in 1 : vector<16x8xf32>, vector<16x8xf32>, vector<16x8xf32>, vector<16x8xf32> -> vector<16x32xf32>
    %313 = arith.truncf %312 : vector<16x32xf32> to vector<16x32xbf16>
    %c1_125 = arith.constant 1 : index
    %c0_126 = arith.constant 0 : index
    %c0_127 = arith.constant 0 : index
    %314 = vector.load %arg4[%c1_125, %c0_126, %c0_127] : memref<2x32x32xbf16, #tpu.memory_space<vmem>>, vector<1x32x32xbf16>
    %315 = vector.shape_cast %314 : vector<1x32x32xbf16> to vector<32x32xbf16>
    %cst_128 = arith.constant dense<0.000000e+00> : vector<16x32xf32>
    %316 = tpu.matmul %313, %315, %cst_128 {dimension_numbers = #tpu.dot_dimension_numbers<[1], [0], [0], [1], [0, 0, 1, 1], [], []>} : vector<16x32xbf16>, vector<32x32xbf16>, vector<16x32xf32> -> vector<16x32xf32>
    %c15 = arith.constant 15 : index
    %c0_129 = arith.constant 0 : index
    %317 = vector.load %arg9[%c15, %c0_129] : memref<24x128xf32, #tpu.memory_space<vmem>>, vector<1x32xf32>
    %318 = vector.broadcast %317 : vector<1x32xf32> to vector<16x32xf32>
    %319 = arith.addf %316, %318 : vector<16x32xf32>
    %320 = arith.addf %220, %319 : vector<16x32xf32>
    %cst_130 = arith.constant dense<0.000000e+00> : vector<16xf32>
    %321 = vector.multi_reduction <add>, %320, %cst_130 [1] : vector<16x32xf32> to vector<16xf32>
    %322 = vector.shape_cast %321 : vector<16xf32> to vector<16x1xf32>
    %cst_131 = arith.constant 3.200000e+01 : f32
    %323 = vector.broadcast %cst_131 : f32 to vector<16x1xf32>
    %324 = arith.divf %322, %323 : vector<16x1xf32>
    %325 = vector.broadcast %324 : vector<16x1xf32> to vector<16x32xf32>
    %326 = arith.subf %320, %325 : vector<16x32xf32>
    %327 = arith.mulf %326, %326 : vector<16x32xf32>
    %cst_132 = arith.constant dense<0.000000e+00> : vector<16xf32>
    %328 = vector.multi_reduction <add>, %327, %cst_132 [1] : vector<16x32xf32> to vector<16xf32>
    %329 = vector.shape_cast %328 : vector<16xf32> to vector<16x1xf32>
    %cst_133 = arith.constant 3.200000e+01 : f32
    %330 = vector.broadcast %cst_133 : f32 to vector<16x1xf32>
    %331 = arith.divf %329, %330 : vector<16x1xf32>
    %332 = vector.broadcast %324 : vector<16x1xf32> to vector<16x32xf32>
    %333 = arith.subf %320, %332 : vector<16x32xf32>
    %cst_134 = arith.constant 9.99999996E-13 : f32
    %334 = vector.broadcast %cst_134 : f32 to vector<16x1xf32>
    %335 = arith.addf %331, %334 : vector<16x1xf32>
    %336 = math.rsqrt %335 : vector<16x1xf32>
    %337 = vector.broadcast %336 : vector<16x1xf32> to vector<16x32xf32>
    %338 = arith.mulf %333, %337 : vector<16x32xf32>
    %c16 = arith.constant 16 : index
    %c0_135 = arith.constant 0 : index
    %339 = vector.load %arg9[%c16, %c0_135] : memref<24x128xf32, #tpu.memory_space<vmem>>, vector<1x32xf32>
    %340 = vector.broadcast %339 : vector<1x32xf32> to vector<16x32xf32>
    %341 = arith.mulf %338, %340 : vector<16x32xf32>
    %c17 = arith.constant 17 : index
    %c0_136 = arith.constant 0 : index
    %342 = vector.load %arg9[%c17, %c0_136] : memref<24x128xf32, #tpu.memory_space<vmem>>, vector<1x32xf32>
    %343 = vector.broadcast %342 : vector<1x32xf32> to vector<16x32xf32>
    %344 = arith.addf %341, %343 : vector<16x32xf32>
    %345 = arith.truncf %344 : vector<16x32xf32> to vector<16x32xbf16>
    %c1_137 = arith.constant 1 : index
    %c0_138 = arith.constant 0 : index
    %c0_139 = arith.constant 0 : index
    %346 = vector.load %arg5[%c1_137, %c0_138, %c0_139] : memref<2x32x64xbf16, #tpu.memory_space<vmem>>, vector<1x32x64xbf16>
    %347 = vector.shape_cast %346 : vector<1x32x64xbf16> to vector<32x64xbf16>
    %cst_140 = arith.constant dense<0.000000e+00> : vector<16x64xf32>
    %348 = tpu.matmul %345, %347, %cst_140 {dimension_numbers = #tpu.dot_dimension_numbers<[1], [0], [0], [1], [0, 0, 1, 1], [], []>} : vector<16x32xbf16>, vector<32x64xbf16>, vector<16x64xf32> -> vector<16x64xf32>
    %c18 = arith.constant 18 : index
    %c0_141 = arith.constant 0 : index
    %349 = vector.load %arg9[%c18, %c0_141] : memref<24x128xf32, #tpu.memory_space<vmem>>, vector<1x64xf32>
    %350 = vector.broadcast %349 : vector<1x64xf32> to vector<16x64xf32>
    %351 = arith.addf %348, %350 : vector<16x64xf32>
    %cst_142 = arith.constant 5.000000e-01 : f32
    %352 = vector.broadcast %cst_142 : f32 to vector<16x64xf32>
    %353 = arith.mulf %352, %351 : vector<16x64xf32>
    %cst_143 = arith.constant 4.471500e-02 : f32
    %354 = vector.broadcast %cst_143 : f32 to vector<16x64xf32>
    %355 = arith.mulf %354, %351 : vector<16x64xf32>
    %356 = arith.mulf %355, %351 : vector<16x64xf32>
    %357 = arith.mulf %356, %351 : vector<16x64xf32>
    %358 = arith.addf %351, %357 : vector<16x64xf32>
    %cst_144 = arith.constant 0.797884583 : f32
    %359 = vector.broadcast %cst_144 : f32 to vector<16x64xf32>
    %360 = arith.mulf %359, %358 : vector<16x64xf32>
    %361 = math.tanh %360 : vector<16x64xf32>
    %cst_145 = arith.constant 1.000000e+00 : f32
    %362 = vector.broadcast %cst_145 : f32 to vector<16x64xf32>
    %363 = arith.addf %362, %361 : vector<16x64xf32>
    %364 = arith.mulf %353, %363 : vector<16x64xf32>
    %365 = arith.truncf %364 : vector<16x64xf32> to vector<16x64xbf16>
    %c1_146 = arith.constant 1 : index
    %c0_147 = arith.constant 0 : index
    %c0_148 = arith.constant 0 : index
    %366 = vector.load %arg6[%c1_146, %c0_147, %c0_148] : memref<2x64x32xbf16, #tpu.memory_space<vmem>>, vector<1x64x32xbf16>
    %367 = vector.shape_cast %366 : vector<1x64x32xbf16> to vector<64x32xbf16>
    %cst_149 = arith.constant dense<0.000000e+00> : vector<16x32xf32>
    %368 = tpu.matmul %365, %367, %cst_149 {dimension_numbers = #tpu.dot_dimension_numbers<[1], [0], [0], [1], [0, 0, 1, 1], [], []>} : vector<16x64xbf16>, vector<64x32xbf16>, vector<16x32xf32> -> vector<16x32xf32>
    %c19 = arith.constant 19 : index
    %c0_150 = arith.constant 0 : index
    %369 = vector.load %arg9[%c19, %c0_150] : memref<24x128xf32, #tpu.memory_space<vmem>>, vector<1x32xf32>
    %370 = vector.broadcast %369 : vector<1x32xf32> to vector<16x32xf32>
    %371 = arith.addf %368, %370 : vector<16x32xf32>
    %372 = arith.addf %344, %371 : vector<16x32xf32>
    %cst_151 = arith.constant dense<0.000000e+00> : vector<16xf32>
    %373 = vector.multi_reduction <add>, %372, %cst_151 [1] : vector<16x32xf32> to vector<16xf32>
    %374 = vector.shape_cast %373 : vector<16xf32> to vector<16x1xf32>
    %cst_152 = arith.constant 3.200000e+01 : f32
    %375 = vector.broadcast %cst_152 : f32 to vector<16x1xf32>
    %376 = arith.divf %374, %375 : vector<16x1xf32>
    %377 = vector.broadcast %376 : vector<16x1xf32> to vector<16x32xf32>
    %378 = arith.subf %372, %377 : vector<16x32xf32>
    %379 = arith.mulf %378, %378 : vector<16x32xf32>
    %cst_153 = arith.constant dense<0.000000e+00> : vector<16xf32>
    %380 = vector.multi_reduction <add>, %379, %cst_153 [1] : vector<16x32xf32> to vector<16xf32>
    %381 = vector.shape_cast %380 : vector<16xf32> to vector<16x1xf32>
    %cst_154 = arith.constant 3.200000e+01 : f32
    %382 = vector.broadcast %cst_154 : f32 to vector<16x1xf32>
    %383 = arith.divf %381, %382 : vector<16x1xf32>
    %384 = vector.broadcast %376 : vector<16x1xf32> to vector<16x32xf32>
    %385 = arith.subf %372, %384 : vector<16x32xf32>
    %cst_155 = arith.constant 9.99999996E-13 : f32
    %386 = vector.broadcast %cst_155 : f32 to vector<16x1xf32>
    %387 = arith.addf %383, %386 : vector<16x1xf32>
    %388 = math.rsqrt %387 : vector<16x1xf32>
    %389 = vector.broadcast %388 : vector<16x1xf32> to vector<16x32xf32>
    %390 = arith.mulf %385, %389 : vector<16x32xf32>
    %c20 = arith.constant 20 : index
    %c0_156 = arith.constant 0 : index
    %391 = vector.load %arg9[%c20, %c0_156] : memref<24x128xf32, #tpu.memory_space<vmem>>, vector<1x32xf32>
    %392 = vector.broadcast %391 : vector<1x32xf32> to vector<16x32xf32>
    %393 = arith.mulf %390, %392 : vector<16x32xf32>
    %c21 = arith.constant 21 : index
    %c0_157 = arith.constant 0 : index
    %394 = vector.load %arg9[%c21, %c0_157] : memref<24x128xf32, #tpu.memory_space<vmem>>, vector<1x32xf32>
    %395 = vector.broadcast %394 : vector<1x32xf32> to vector<16x32xf32>
    %396 = arith.addf %393, %395 : vector<16x32xf32>
    %397 = vector.extract_strided_slice %396 {offsets = [0, 0], sizes = [1, 32], strides = [1, 1]} : vector<16x32xf32> to vector<1x32xf32>
    %398 = vector.extract_strided_slice %396 {offsets = [8, 0], sizes = [1, 32], strides = [1, 1]} : vector<16x32xf32> to vector<1x32xf32>
    %399 = tpu.concatenate %397, %398 in 0 : vector<1x32xf32>, vector<1x32xf32> -> vector<2x32xf32>
    %400 = arith.truncf %399 : vector<2x32xf32> to vector<2x32xbf16>
    %c0_158 = arith.constant 0 : index
    %c0_159 = arith.constant 0 : index
    %401 = vector.load %arg7[%c0_158, %c0_159] : memref<32x32xbf16, #tpu.memory_space<vmem>>, vector<32x32xbf16>
    %cst_160 = arith.constant dense<0.000000e+00> : vector<2x32xf32>
    %402 = tpu.matmul %400, %401, %cst_160 {dimension_numbers = #tpu.dot_dimension_numbers<[1], [0], [0], [1], [0, 0, 1, 1], [], []>} : vector<2x32xbf16>, vector<32x32xbf16>, vector<2x32xf32> -> vector<2x32xf32>
    %c22 = arith.constant 22 : index
    %c0_161 = arith.constant 0 : index
    %403 = vector.load %arg9[%c22, %c0_161] : memref<24x128xf32, #tpu.memory_space<vmem>>, vector<1x32xf32>
    %404 = vector.broadcast %403 : vector<1x32xf32> to vector<2x32xf32>
    %405 = arith.addf %402, %404 : vector<2x32xf32>
    %406 = math.tanh %405 : vector<2x32xf32>
    %407 = arith.truncf %406 : vector<2x32xf32> to vector<2x32xbf16>
    %c0_162 = arith.constant 0 : index
    %c0_163 = arith.constant 0 : index
    %408 = vector.load %arg8[%c0_162, %c0_163] : memref<32x128xbf16, #tpu.memory_space<vmem>>, vector<32x128xbf16>
    %cst_164 = arith.constant dense<0.000000e+00> : vector<2x128xf32>
    %409 = tpu.matmul %407, %408, %cst_164 {dimension_numbers = #tpu.dot_dimension_numbers<[1], [0], [0], [1], [0, 0, 1, 1], [], []>} : vector<2x32xbf16>, vector<32x128xbf16>, vector<2x128xf32> -> vector<2x128xf32>
    %c23 = arith.constant 23 : index
    %c0_165 = arith.constant 0 : index
    %410 = vector.load %arg9[%c23, %c0_165] : memref<24x128xf32, #tpu.memory_space<vmem>>, vector<1x128xf32>
    %411 = vector.broadcast %410 : vector<1x128xf32> to vector<2x128xf32>
    %412 = arith.addf %409, %411 : vector<2x128xf32>
    %cst_166 = arith.constant 0.000000e+00 : f32
    %413 = vector.broadcast %cst_166 : f32 to vector<2x96xf32>
    %414 = tpu.concatenate %399, %413 in 1 : vector<2x32xf32>, vector<2x96xf32> -> vector<2x128xf32>
    %415 = tpu.concatenate %412, %414 in 0 : vector<2x128xf32>, vector<2x128xf32> -> vector<4x128xf32>
    %c0_167 = arith.constant 0 : index
    %c0_168 = arith.constant 0 : index
    %416 = vector.load %arg10[%c0_167, %c0_168] : memref<4x128xf32, #tpu.memory_space<vmem>>, vector<4x128xf32>
    tpu.vector_store %arg10[%c0_167, %c0_168], %415 {strides = array<i32>} : memref<4x128xf32, #tpu.memory_space<vmem>>, vector<4x128xf32>,
    return
  }
}

</mosaic_0001>

<bundles_post_ra>
// kernel: wrapped_backbone_forward.1
= control target key start
LH: loop header
LB: loop body
LE: loop exit
PB: predicated region body
PF: predicated region fallthrough
CT: control target
= control target key end

     0   :  { %15 = vsyncpa [#allocation3], 0  ;;  %s4546_s0 = inlined_call_operand.vmem [shape: s32[16,1], index: 0, kind: input, shape index: {}]   ;;  %s4547_s1 = inlined_call_operand.vmem [shape: bf16[128,32], index: 1, kind: input, shape index: {}]   ;;  %s4548_s2 = inlined_call_operand.hbm [shape: f32[16,32], index: 2, kind: input, shape index: {}]   ;;  %s4549_s3 = inlined_call_operand.vmem [shape: bf16[2,3,32,32], index: 3, kind: input, shape index: {}]   ;;  %s4550_s4 = inlined_call_operand.vmem [shape: bf16[2,32,32], index: 4, kind: input, shape index: {}]   ;;  %s4551_s5 = inlined_call_operand.vmem [shape: bf16[2,32,64], index: 5, kind: input, shape index: {}]   ;;  %s4552_s6 = inlined_call_operand.vmem [shape: bf16[2,64,32], index: 6, kind: input, shape index: {}]   ;;  %s4553_s7 = inlined_call_operand.hbm [shape: bf16[32,32], index: 7, kind: input, shape index: {}]   ;;  %s4554_s8 = inlined_call_operand.hbm [shape: bf16[32,128], index: 8, kind: input, shape index: {}]   ;;  %s4555_s9 = inlined_call_operand.vmem [shape: f32[24,128], index: 9, kind: input, shape index: {}]   ;;  %s4556_s10 = inlined_call_operand.vmem [shape: f32[4,128], index: 10, kind: output, shape index: {}]  }
   0x1   :  { %16 = vsyncpa [#allocation5], 0  ;;  %s3885_s13 = smov [#allocation4]  }
   0x2   :  { %s46_s14 = sshll.u32 %s3885_s13, 4  ;;  %s47_s14 = int_to_ptr.vmem [resolvable:$true] %s46_s14 }
   0x3   :  { %s3829_s15 = scalar_lea.vmem %s47_s14, 256  ;;  %p3834_p1 = scmp.lt.s32.totalorder %s47_s14, %s47_s14 }
   0x4   :  { %p3830_p0 = scmp.ne.s32.totalorder %s47_s14, %s3829_s15  ;;  %p3835_p2 = scmp.lt.s32.totalorder %s3829_s15, %s3829_s15 }
   0x6   :  { %p3836_p3 = por %p3835_p2, %p3834_p1 }
   0x8   :  { %p3837_p4 = pnand %p3836_p3, %p3830_p0 }
   0xa   :  { %3840 = shalt.err (!%p3837_p4)
}
   0xb   :  { %s3886_s16 = smov 64   ;;  %s3887_s17 = smov 4  }
   0xc   :  { %52 = dma.hbm_to_vmem [thread:$0]  %s4553_s7, 256, %s47_s14, [#allocation5], %s3886_s16, %s3886_s16, %s3887_s17  }
   0xd   :  { %s3888_s20 = smov [#allocation2]  }
   0xe   :  { %s26_s21 = sshll.u32 %s3888_s20, 4  ;;  %s27_s21 = int_to_ptr.vmem [resolvable:$true] %s26_s21 }
   0xf   :  { %s3849_s22 = scalar_lea.vmem %s27_s21, 256  ;;  %p3854_p6 = scmp.lt.s32.totalorder %s27_s21, %s27_s21 }
  0x10   :  { %p3850_p5 = scmp.ne.s32.totalorder %s27_s21, %s3849_s22  ;;  %p3855_p7 = scmp.lt.s32.totalorder %s3849_s22, %s3849_s22 }
  0x12   :  { %p3856_p8 = por %p3855_p7, %p3854_p6 }
  0x14   :  { %p3857_p9 = pnand %p3856_p8, %p3850_p5 }
  0x16   :  { %3860 = shalt.err (!%p3857_p9)
}
  0x17   :  { %s3889_s23 = smov 128   ;;  %s3890_s24 = smov 8  }
  0x18   :  { %32 = dma.hbm_to_vmem [thread:$0]  %s4548_s2, 256, %s27_s21, [#allocation3], %s3889_s23, %s3889_s23, %s3890_s24  }
  0x19   :  { %s3891_s27 = smov [#allocation6]  }
  0x1a   :  { %s58_s28 = sshll.u32 %s3891_s27, 4  ;;  %s59_s28 = int_to_ptr.vmem [resolvable:$true] %s58_s28 }
  0x1b   :  { %s3869_s7 = scalar_lea.vmem %s59_s28, 256  ;;  %p3874_p11 = scmp.lt.s32.totalorder %s59_s28, %s59_s28 }
  0x1c   :  { %p3870_p10 = scmp.ne.s32.totalorder %s59_s28, %s3869_s7  ;;  %p3875_p12 = scmp.lt.s32.totalorder %s3869_s7, %s3869_s7 }
  0x1e   :  { %p3876_p13 = por %p3875_p12, %p3874_p11 }
  0x20   :  { %p3877_p0 = pnand %p3876_p13, %p3870_p10 }
  0x22   :  { %3880 = shalt.err (!%p3877_p0)
}
  0x23   :  { %64 = dma.hbm_to_vmem [thread:$0]  %s4554_s8, 256, %s59_s28, [#allocation5], %s3886_s16, %s3886_s16, %s3887_s17  }
  0x24   :  { %3881 = dma.done.wait [#allocation3], 256  }
  0x25   :  { %3882 = vsyncadd [#allocation3], 4294967040 }
  0x26   :  { %3883 = dma.done.wait [#allocation5], 512  }
  0x27   :  { %3884 = vsyncadd [#allocation5], 4294966784  ;;  %v3892_v0 = vmov 0   ;;  %v3893_v1 = vmov 0.0   ;;  %v77_v2 = vld [vmem:[%s4546_s0] sm:$0xff]  ;;  %v3687_v3 = vld [vmem:[%s4547_s1 + $0x38] sm:$0xff]   ;;  %v79_v12 = vlaneseq }
  0x28   :  { %3656 = vset.pattern.permute.xlu0 %v3892_v0  ;;  %3387 = vmatprep.subr.bf16.mxu0 %v3893_v1  ;;  %v78_v4 = vld [vmem:[%s4546_s0 + $0x8] sm:$0xff]  ;;  %vm3894_vm0 = vmmov 0   ;;  %v3688_v5 = vld [vmem:[%s4547_s1 + $0x30] sm:$0xff]   ;;  %v3690_v7 = vld [vmem:[%s4547_s1 + $0x20] sm:$0xff]   ;;  %v3895_v16 = vmov 1.0|1.0  }
  0x29   :  { %3407 = vmatprep.subr.bf16.mxu1 %v3893_v1  ;;  %82 = vperm.xlu0 %3656, %v77_v2   ;;  %v3689_v6 = vld [vmem:[%s4547_s1 + $0x28] sm:$0xff]   ;;  %v3691_v8 = vld [vmem:[%s4547_s1 + $0x18] sm:$0xff]   ;;  %v3692_v9 = vld [vmem:[%s4547_s1 + $0x10] sm:$0xff]   ;;  %v4011_v14 = vand.u32 127, %v79_v12  ;;  %vm201_vm4 = vcmask 261120   ;;  %vm445_vm5 = vcmask 64512  }
  0x2a   :  { %3403 = vmatprep.mubr.msk.bf16.mxu0 %vm3894_vm0, %v3893_v1  ;;  %3411 = vmatprep.mubr.msk.bf16.mxu1 %vm3894_vm0, %v3893_v1  ;;  %v3693_v10 = vld [vmem:[%s4547_s1 + $0x8] sm:$0xff]   ;;  %v3694_v11 = vld [vmem:[%s4547_s1] sm:$0xff]   ;;  %v3697_v55 = vld [vmem:[%s4549_s3 + $0x18] sm:$0xff]   ;;  %s3896_s22 = smov 120   ;;  %s3897_s26 = smov 112   ;;  %vm537_vm8 = vcmask 130048  }
  0x2b   :  { %3388 = vmatpush3.bf16.msra.mxu0 %v3687_v3  ;;  %v110_v17 = vld [vmem:[#allocation2] sm:$0xff]  ;;  %v111_v21 = vld [vmem:[#allocation2 + $0x8] sm:$0xff]  ;;  %v3698_v57 = vld [vmem:[%s4549_s3 + $0x10] sm:$0xff]   ;;  %s3899_s1 = smov 104   ;;  %s3900_s7 = smov 16   ;;  %vm1283_vm9 = vcmask 195584  }
  0x2c   :  { %3389 = vmatprep.subr.bf16.mxu0 %v3893_v1  ;;  %v3695_v37 = vld [vmem:[%s4549_s3 + $0x8] sm:$0xff]   ;;  %v3696_v38 = vld [vmem:[%s4549_s3] sm:$0xff]   ;;  %s3901_s12 = smov 24   ;;  %vm1516_vm10 = vcmask 523264   ;;  %vm2956_vm11 = vcmask 1040384   ;;  %vm3093_vm12 = vcmask 1041408  }
  0x2d   :  { %85 = vperm.xlu0 %3656, %v78_v4   ;;  %3408 = vmatpush3.bf16.msra.mxu1 %v3695_v37  ;;  %v3114_v47 = vld [vmem:[%s4555_s9] ss:$0 sm:$0xff]  ;;  %v3115_v51 = vld [vmem:[%s4555_s9 + $0x1] ss:$0 sm:$0xff]  ;;  %v3699_v58 = vld [vmem:[%s4549_s3 + $0x28] sm:$0xff]  }
  0x2e   :  { %3409 = vmatprep.subr.bf16.mxu1 %v3893_v1  ;;  %v3700_v59 = vld [vmem:[%s4549_s3 + $0x20] sm:$0xff]  }
  0x2f   :  { %3390 = vmatpush3.bf16.msra.mxu0 %v3688_v5  ;;  %v3116_v60 = vld [vmem:[%s4555_s9 + $0x2] ss:$0 sm:$0xff]  ;;  %v3124_v4 = vld [vmem:[%s4555_s9 + $0x3] ss:$0 sm:$0xff] }
  0x30   :  { %3391 = vmatprep.subr.bf16.mxu0 %v3893_v1 }
  0x31   :  { %3410 = vmatpush3.bf16.msra.mxu1 %v3696_v38 }
  0x32   :  { %3415 = vmatprep.subr.bf16.mxu1 %v3893_v1 }
  0x33   :  { %3392 = vmatpush3.bf16.msra.mxu0 %v3689_v6 }
  0x34   :  { %3393 = vmatprep.subr.bf16.mxu0 %v3893_v1 }
  0x37   :  { %3394 = vmatpush3.bf16.msra.mxu0 %v3690_v7 }
  0x38   :  { %3395 = vmatprep.subr.bf16.mxu0 %v3893_v1 }
  0x3b   :  { %3396 = vmatpush3.bf16.msra.mxu0 %v3691_v8 }
  0x3c   :  { %3397 = vmatprep.subr.bf16.mxu0 %v3893_v1 }
  0x3f   :  { %3398 = vmatpush3.bf16.msra.mxu0 %v3692_v9 }
  0x40   :  { %3399 = vmatprep.subr.bf16.mxu0 %v3893_v1 }
  0x43   :  { %3400 = vmatpush3.bf16.msra.mxu0 %v3693_v10 }
  0x44   :  { %3401 = vmatprep.subr.bf16.mxu0 %v3893_v1 }
  0x47   :  { %3402 = vmatpush3.bf16.msra.mxu0 %v3694_v11 }
  0xa4   :  { %v83_v13 = vpop.permute.xlu0 %82 }
  0xa5   :  { %vm87_vm1 = vcmp.eq.s32.totalorder %v83_v13, %v4011_v14 }
  0xa8   :  { %v86_v15 = vpop.permute.xlu0 %85 }
  0xa9   :  { %vm88_vm2 = vcmp.eq.s32.totalorder %v86_v15, %v4011_v14  ;;  %v3132_v15 = vld [vmem:[%s4555_s9 + $0x4] ss:$0 sm:$0xff] }
  0xaa   :  { %vm3112_vm3 = vmpackc.low %vm88_vm2, %vm87_vm1 }
  0xab   :  { %3404 = vmatmul.mubr.msk.bf16.vlgmr.msra.gmra.mxu0 %vm3112_vm3, %v3895_v16 }
 0x16b   :  { %v194_v18 = vpop.f32.mrf.mxu0 }
 0x16c   :  { %v195_v19 = vadd.f32 %v194_v18, %v110_v17 }
 0x16d   :  { %v3405_v20 = vpop.f32.mrf.mxu0 }
 0x16e   :  { %v202_v22 = vsel %vm201_vm4, %v195_v19, 0.0 }
 0x16f   :  { %203 = vadd.xlane.f32.xlu1 %v202_v22  ;;  %v197_v23 = vpop.f32.mrf.mxu0 }
 0x170   :  { %v198_v24 = vadd.f32 %v197_v23, %v111_v21 }
 0x171   :  { %v3406_v25 = vpop.f32.mrf.mxu0 }
 0x172   :  { %v205_v26 = vsel %vm201_vm4, %v198_v24, 0.0 }
 0x173   :  { %206 = vadd.xlane.f32.xlu1 %v205_v26 }
 0x1f8   :  { %v204_v27 = vpop.xlane.xlu1 %203 }
 0x1f9   :  { %v209_v28 = vmul.f32 0.03125, %v204_v27 }
 0x1fb   :  { %v211_v29 = vsub.f32 %v195_v19, %v209_v28  ;;  %v244_v28 = vshrl.u32 %v79_v12, 7 }
 0x1fc   :  { %v207_v30 = vpop.xlane.xlu1 %206 }
 0x1fd   :  { %v210_v31 = vmul.f32 0.03125, %v207_v30  ;;  %v213_v32 = vmul.f32 %v211_v29, %v211_v29 }
 0x1ff   :  { %v212_v33 = vsub.f32 %v198_v24, %v210_v31  ;;  %v215_v34 = vsel %vm201_vm4, %v213_v32, 0.0  ;;  %v248_v31 = vshra.s32 %v4011_v14, 3  ;;  %v246_v32 = vshra.s32 %v244_v28, 3 }
 0x200   :  { %216 = vadd.xlane.f32.xlu0 %v215_v34 }
 0x201   :  { %v214_v35 = vmul.f32 %v212_v33, %v212_v33  ;;  %vm249_vm7 = vcmp.eq.s32.totalorder %v246_v32, %v248_v31 }
 0x203   :  { %v218_v36 = vsel %vm201_vm4, %v214_v35, 0.0 }
 0x204   :  { %219 = vadd.xlane.f32.xlu1 %v218_v36 }
 0x289   :  { %v217_v39 = vpop.xlane.xlu0 %216 }
 0x28a   :  { %v221_v40 = vmul.f32 0.03125, %v217_v39 }
 0x28c   :  { %v223_v41 = vadd.f32 1e-12, %v221_v40 }
 0x28d   :  { %v220_v42 = vpop.xlane.xlu1 %219 }
 0x28e   :  { %3727 = vrsqrt.f32 %v223_v41  ;;  %v222_v43 = vmul.f32 0.03125, %v220_v42 }
 0x290   :  { %v224_v44 = vadd.f32 1e-12, %v222_v43 }
 0x292   :  { %3729 = vrsqrt.f32 %v224_v44 }
 0x29b   :  { %v3728_v45 = vpop.eup %3727 }
 0x29c   :  { %v227_v46 = vmul.f32 %v3728_v45, %v211_v29  ;;  %v245_v29 = vadd.s32 8, %v244_v28 }
 0x29e   :  { %v234_v50 = vmul.f32 %v3114_v47, %v227_v46  ;;  %v247_v30 = vshra.s32 %v245_v29, 3 }
 0x29f   :  { %v3730_v48 = vpop.eup %3729 }
 0x2a0   :  { %v228_v49 = vmul.f32 %v3730_v48, %v212_v33  ;;  %v4033_v53 = vadd.f32 %v3115_v51, %v234_v50  ;;  %vm250_vm6 = vcmp.eq.s32.totalorder %v247_v30, %v248_v31  ;;  %v3898_v33 = vmov -1e+30  }
 0x2a1   :  { %v4128_v34 = vsel %vm250_vm6, 0.0, %v3898_v33  ;;  %v4130_v37 = vsel %vm249_vm7, 0.0, %v3898_v33 }
 0x2a2   :  { %v235_v52 = vmul.f32 %v3114_v47, %v228_v49 }
 0x2a4   :  { %v4035_v54 = vadd.f32 %v3115_v51, %v235_v52 }
 0x2a6   :  { %v253_v56 = vpack.c.bf16 %v4035_v54, %v4033_v53 }
 0x2a8   :  { %3412 = vmatmul.mubr.msk.bf16.vlgmr.msra.gmra.mxu1 %vm201_vm4, %v253_v56 }
 0x2a9   :  { %3416 = vmatpush3.bf16.msra.mxu1 %v3697_v55  ;;  %3419 = vmatprep.mubr.msk.bf16.mxu1 %vm3894_vm0, %v3893_v1 }
 0x2aa   :  { %3417 = vmatprep.subr.bf16.mxu1 %v3893_v1 }
 0x2ad   :  { %3418 = vmatpush3.bf16.msra.mxu1 %v3698_v57 }
 0x2ae   :  { %3423 = vmatprep.subr.bf16.mxu1 %v3893_v1 }
 0x2b0   :  { %3420 = vmatmul.mubr.msk.bf16.vlgmr.msra.gmra.mxu1 %vm201_vm4, %v253_v56 }
 0x2b1   :  { %3424 = vmatpush3.bf16.msra.mxu1 %v3699_v58  ;;  %3427 = vmatprep.mubr.msk.bf16.mxu1 %vm3894_vm0, %v3893_v1 }
 0x2b2   :  { %3425 = vmatprep.subr.bf16.mxu1 %v3893_v1 }
 0x2b5   :  { %3426 = vmatpush3.bf16.msra.mxu1 %v3700_v59 }
 0x2b8   :  { %3428 = vmatmul.mubr.msk.bf16.vlgmr.msra.gmra.mxu1 %vm201_vm4, %v253_v56 }
 0x368   :  { %v312_v61 = vpop.f32.mrf.mxu1 }
 0x369   :  { %v4064_v62 = vadd.f32 %v3116_v60, %v312_v61 }
 0x36a   :  { %v3413_v63 = vpop.f32.mrf.mxu1 }
 0x36b   :  { %641 = vrot.lane.b32.xlu1 %v4064_v62, %s3896_s22  ;;  %3435 = vmatprep.mubr.msk.f32.mxu1 %vm445_vm5, %v4064_v62 }
 0x36c   :  { %v315_v0 = vpop.f32.mrf.mxu1 }
 0x36d   :  { %v4070_v2 = vadd.f32 %v3116_v60, %v315_v0 }
 0x36e   :  { %v3414_v3 = vpop.f32.mrf.mxu1 }
 0x36f   :  { %643 = vrot.lane.b32.xlu0 %v4070_v2, %s3896_s22 }
 0x370   :  { %v375_v5 = vpop.f32.mrf.mxu1 }
 0x371   :  { %v4077_v6 = vadd.f32 %v3124_v4, %v375_v5 }
 0x372   :  { %v3421_v7 = vpop.f32.mrf.mxu1 }
 0x373   :  { %645 = vrot.lane.b32.xlu1 %v4077_v6, %s3896_s22 }
 0x374   :  { %v378_v8 = vpop.f32.mrf.mxu1 }
 0x375   :  { %v4081_v9 = vadd.f32 %v3124_v4, %v378_v8 }
 0x376   :  { %v3422_v10 = vpop.f32.mrf.mxu1 }
 0x377   :  { %647 = vrot.lane.b32.xlu1 %v4081_v9, %s3896_s22  ;;  %3431 = vmatprep.subr.msk.mxu1 %vm445_vm5, %v4081_v9 }
 0x378   :  { %v438_v11 = vpop.f32.mrf.mxu1  ;;  %3432 = vmatpush3.xpose.msk.msra.mxu1 %vm445_vm5, %v4081_v9 }
 0x379   :  { %3433 = vmatprep.subr.msk.mxu1 %vm445_vm5, %v4077_v6  ;;  %v4104_v19 = vadd.f32 %v3132_v15, %v438_v11 }
 0x37a   :  { %v3429_v13 = vpop.f32.mrf.mxu1 }
 0x37b   :  { %851 = vrot.lane.b32.xlu1 %v4077_v6, %s3897_s26 }
 0x37c   :  { %v441_v16 = vpop.f32.mrf.mxu1  ;;  %3434 = vmatpush3.xpose.msk.msra.mxu1 %vm445_vm5, %v4077_v6 }
 0x37d   :  { %v4098_v17 = vadd.f32 %v3132_v15, %v441_v16 }
 0x37e   :  { %v3430_v18 = vpop.f32.mrf.mxu1 }
 0x37f   :  { %853 = vrot.lane.b32.xlu1 %v4081_v9, %s3897_s26  ;;  %3436 = vmatmul.mubr.msk.f32.vlgmr.msra.gmra.mxu1 %vm445_vm5, %v4070_v2 }
 0x380   :  { %3438 = vmatprep.subr.mxu1 %v4098_v17 }
 0x381   :  { %3439 = vmatpush3.msra.mxu1 %v4098_v17 }
 0x382   :  { %3440 = vmatprep.subr.mxu1 %v4104_v19 }
 0x383   :  { %3441 = vmatpush3.msra.mxu1 %v4104_v19  ;;  %847 = vrot.lane.b32.xlu1 %v4064_v62, %s3897_s26 }
 0x387   :  { %849 = vrot.lane.b32.xlu1 %v4070_v2, %s3897_s26 }
 0x3dd   :  { %v642_v20 = vpop.permute.xlu1 %641 }
 0x3de   :  { %3449 = vmatprep.mubr.msk.f32.mxu0 %vm445_vm5, %v642_v20 }
 0x3e1   :  { %v644_v24 = vpop.permute.xlu0 %643 }
 0x3e5   :  { %v646_v21 = vpop.permute.xlu1 %645 }
 0x3e9   :  { %v648_v22 = vpop.permute.xlu1 %647 }
 0x3ea   :  { %3445 = vmatprep.subr.msk.mxu0 %vm445_vm5, %v648_v22 }
 0x3eb   :  { %3446 = vmatpush3.xpose.msk.msra.mxu0 %vm445_vm5, %v648_v22 }
 0x3ec   :  { %3447 = vmatprep.subr.msk.mxu0 %vm445_vm5, %v646_v21 }
 0x3ed   :  { %v852_v23 = vpop.permute.xlu1 %851 }
 0x3ef   :  { %3448 = vmatpush3.xpose.msk.msra.mxu0 %vm445_vm5, %v646_v21 }
 0x3f1   :  { %v854_v25 = vpop.permute.xlu1 %853 }
 0x3f2   :  { %3450 = vmatmul.mubr.msk.f32.vlgmr.msra.gmra.mxu0 %vm445_vm5, %v644_v24  ;;  %3459 = vmatprep.subr.msk.mxu0 %vm445_vm5, %v854_v25 }
 0x3f3   :  { %3460 = vmatpush3.xpose.msk.msra.mxu0 %vm445_vm5, %v854_v25 }
 0x3f4   :  { %3461 = vmatprep.subr.msk.mxu0 %vm445_vm5, %v852_v23 }
 0x3f5   :  { %v848_v26 = vpop.permute.xlu1 %847 }
 0x3f6   :  { %3463 = vmatprep.mubr.msk.f32.mxu0 %vm445_vm5, %v848_v26 }
 0x3f7   :  { %3462 = vmatpush3.xpose.msk.msra.mxu0 %vm445_vm5, %v852_v23 }
 0x3f9   :  { %v850_v27 = vpop.permute.xlu1 %849 }
 0x3fa   :  { %3464 = vmatmul.mubr.msk.f32.vlgmr.msra.gmra.mxu0 %vm445_vm5, %v850_v27 }
 0x43f   :  { %v3437_v35 = vpop.f32.mrf.mxu1 }
 0x440   :  { %v534_v36 = vmul.f32 0.35355338, %v3437_v35 }
 0x441   :  { %v524_v38 = vpop.f32.mrf.mxu1 }
 0x442   :  { %v533_v39 = vmul.f32 0.35355338, %v524_v38  ;;  %v536_v40 = vadd.f32 %v534_v36, %v4128_v34 }
 0x444   :  { %v541_v12 = vsel %vm537_vm8, %v536_v40, -inf  ;;  %v535_v41 = vadd.f32 %v533_v39, %v4130_v37 }
 0x445   :  { %542 = vmax.xlane.f32.xlu0 %v541_v12 }
 0x446   :  { %v538_v14 = vsel %vm537_vm8, %v535_v41, -inf }
 0x447   :  { %539 = vmax.xlane.f32.xlu1 %v538_v14 }
 0x4b2   :  { %v3451_v42 = vpop.f32.mrf.mxu0 }
 0x4b3   :  { %v733_v43 = vmul.f32 0.35355338, %v3451_v42 }
 0x4b4   :  { %v723_v44 = vpop.f32.mrf.mxu0 }
 0x4b5   :  { %v732_v45 = vmul.f32 0.35355338, %v723_v44  ;;  %v735_v46 = vadd.f32 %v733_v43, %v4128_v34 }
 0x4b7   :  { %v739_v47 = vsel %vm537_vm8, %v735_v46, -inf  ;;  %v734_v48 = vadd.f32 %v732_v45, %v4130_v37 }
 0x4b8   :  { %740 = vmax.xlane.f32.xlu0 %v739_v47 }
 0x4b9   :  { %v736_v49 = vsel %vm537_vm8, %v734_v48, -inf }
 0x4ba   :  { %v3465_v50 = vpop.f32.mrf.mxu0  ;;  %737 = vmax.xlane.f32.xlu1 %v736_v49 }
 0x4bb   :  { %v939_v51 = vmul.f32 0.35355338, %v3465_v50 }
 0x4bc   :  { %v929_v59 = vpop.f32.mrf.mxu0 }
 0x4bd   :  { %v941_v52 = vadd.f32 %v939_v51, %v4128_v34  ;;  %v938_v60 = vmul.f32 0.35355338, %v929_v59 }
 0x4bf   :  { %v945_v55 = vsel %vm537_vm8, %v941_v52, -inf  ;;  %v940_v61 = vadd.f32 %v938_v60, %v4130_v37 }
 0x4c0   :  { %946 = vmax.xlane.f32.xlu0 %v945_v55 }
 0x4c1   :  { %v942_v0 = vsel %vm537_vm8, %v940_v61, -inf }
 0x4cb   :  { %762 = vrot.lane.b32.xlu1 %v4098_v17, %s3896_s22 }
 0x4ce   :  { %v543_v56 = vpop.xlane.xlu0 %542 }
 0x4cf   :  { %966 = vrot.lane.b32.xlu1 %v4098_v17, %s3897_s26  ;;  %v545_v57 = vsub.f32 %v536_v40, %v543_v56 }
 0x4d0   :  { %v540_v4 = vpop.xlane.xlu1 %539 }
 0x4d1   :  { %v548_v58 = vmul.f32 1.442695, %v545_v57  ;;  %v544_v5 = vsub.f32 %v535_v41, %v540_v4 }
 0x4d3   :  { %3731 = vpow2.f32 %v548_v58  ;;  %v546_v7 = vmul.f32 1.442695, %v544_v5 }
 0x4d5   :  { %3733 = vpow2.f32 %v546_v7 }
 0x4d6   :  { %760 = vrot.lane.b32.xlu0 %v4104_v19, %s3896_s22 }
 0x4e0   :  { %v3732_v63 = vpop.eup %3731 }
 0x4e1   :  { %v553_v3 = vsel %vm537_vm8, %v3732_v63, 0.0 }
 0x4e2   :  { %v3734_v8 = vpop.eup %3733 }
 0x4e3   :  { %v550_v10 = vsel %vm537_vm8, %v3734_v8, 0.0 }
 0x4f3   :  { %943 = vmax.xlane.f32.xlu1 %v942_v0 }
 0x4f5   :  { %554 = vadd.xlane.f32.xlu0 %v553_v3 }
 0x504   :  { %964 = vrot.lane.b32.xlu1 %v4104_v19, %s3897_s26 }
 0x528   :  { %551 = vadd.xlane.f32.xlu1 %v550_v10 }
 0x541   :  { %v741_v11 = vpop.xlane.xlu0 %740 }
 0x542   :  { %v743_v13 = vsub.f32 %v735_v46, %v741_v11 }
 0x543   :  { %v738_v15 = vpop.xlane.xlu1 %737 }
 0x544   :  { %v746_v16 = vmul.f32 1.442695, %v743_v13  ;;  %v742_v18 = vsub.f32 %v734_v48, %v738_v15 }
 0x546   :  { %3735 = vpow2.f32 %v746_v16  ;;  %v744_v20 = vmul.f32 1.442695, %v742_v18 }
 0x547   :  { %v763_v21 = vpop.permute.xlu1 %762 }
 0x548   :  { %3737 = vpow2.f32 %v744_v20  ;;  %3452 = vmatprep.subr.mxu1 %v763_v21 }
 0x549   :  { %v947_v22 = vpop.xlane.xlu0 %946 }
 0x54a   :  { %v949_v23 = vsub.f32 %v941_v52, %v947_v22 }
 0x54b   :  { %v967_v31 = vpop.permute.xlu1 %966 }
 0x54c   :  { %v952_v24 = vmul.f32 1.442695, %v949_v23 }
 0x54d   :  { %v761_v39 = vpop.permute.xlu0 %760 }
 0x54e   :  { %3739 = vpow2.f32 %v952_v24 }
 0x553   :  { %v3736_v25 = vpop.eup %3735 }
 0x554   :  { %v751_v26 = vsel %vm537_vm8, %v3736_v25, 0.0 }
 0x555   :  { %v3738_v27 = vpop.eup %3737  ;;  %752 = vadd.xlane.f32.xlu0 %v751_v26 }
 0x556   :  { %v748_v28 = vsel %vm537_vm8, %v3738_v27, 0.0 }
 0x557   :  { %749 = vadd.xlane.f32.xlu1 %v748_v28 }
 0x55b   :  { %v3740_v29 = vpop.eup %3739 }
 0x55c   :  { %v957_v30 = vsel %vm537_vm8, %v3740_v29, 0.0 }
 0x55d   :  { %958 = vadd.xlane.f32.xlu0 %v957_v30 }
 0x568   :  { %1055 = vrot.lane.b32.xlu1 %v4077_v6, %s3899_s1 }
 0x573   :  { %1057 = vrot.lane.b32.xlu0 %v4081_v9, %s3899_s1 }
 0x577   :  { %1051 = vrot.lane.b32.xlu0 %v4064_v62, %s3899_s1 }
 0x57c   :  { %v944_v32 = vpop.xlane.xlu1 %943 }
 0x57d   :  { %v948_v33 = vsub.f32 %v940_v61, %v944_v32 }
 0x57e   :  { %v555_v40 = vpop.xlane.xlu0 %554 }
 0x57f   :  { %v950_v35 = vmul.f32 1.442695, %v948_v33 }
 0x580   :  { %v965_v6 = vpop.permute.xlu1 %964 }
 0x581   :  { %3741 = vpow2.f32 %v950_v35 }
 0x582   :  { %3743 = vrcp.f32 %v555_v40 }
 0x58e   :  { %v3742_v36 = vpop.eup %3741 }
 0x58f   :  { %v954_v38 = vsel %vm537_vm8, %v3742_v36, 0.0  ;;  %v3744_v12 = vpop.eup %3743 }
 0x590   :  { %955 = vadd.xlane.f32.xlu1 %v954_v38  ;;  %v559_v14 = vmul.f32 %v3744_v12, %v3732_v63 }
 0x5a1   :  { %1053 = vrot.lane.b32.xlu1 %v4070_v2, %s3899_s1 }
 0x5b1   :  { %v552_v9 = vpop.xlane.xlu1 %551 }
 0x5b2   :  { %3745 = vrcp.f32 %v552_v9 }
 0x5bf   :  { %v3746_v62 = vpop.eup %3745 }
 0x5c0   :  { %v558_v41 = vmul.f32 %v3746_v62, %v3734_v8 }
 0x5c2   :  { %3442 = vmatprep.mubr.msk.f32.mxu1 %vm537_vm8, %v558_v41 }
 0x5c3   :  { %3443 = vmatmul.mubr.msk.f32.vlgmr.msra.gmra.mxu1 %vm537_vm8, %v559_v14 }
 0x5c4   :  { %3453 = vmatpush3.msra.mxu1 %v763_v21 }
 0x5c5   :  { %3454 = vmatprep.subr.mxu1 %v761_v39 }
 0x5c6   :  { %3455 = vmatpush3.msra.mxu1 %v761_v39  ;;  %v3702_v39 = vld [vmem:[%s4550_s4] sm:$0xff]  }
 0x5c7   :  { %3466 = vmatprep.subr.mxu1 %v967_v31 }
 0x5de   :  { %v753_v42 = vpop.xlane.xlu0 %752 }
 0x5df   :  { %3747 = vrcp.f32 %v753_v42 }
 0x5e0   :  { %v750_v2 = vpop.xlane.xlu1 %749 }
 0x5e1   :  { %3749 = vrcp.f32 %v750_v2 }
 0x5e4   :  { %v1056_v49 = vpop.permute.xlu1 %1055 }
 0x5e6   :  { %v959_v45 = vpop.xlane.xlu0 %958 }
 0x5e7   :  { %3751 = vrcp.f32 %v959_v45 }
 0x5ea   :  { %v1058_v48 = vpop.permute.xlu0 %1057 }
 0x5ec   :  { %v3748_v43 = vpop.eup %3747 }
 0x5ed   :  { %v757_v47 = vmul.f32 %v3748_v43, %v3736_v25 }
 0x5ee   :  { %v3750_v44 = vpop.eup %3749  ;;  %v1052_v57 = vpop.permute.xlu0 %1051 }
 0x5ef   :  { %v756_v46 = vmul.f32 %v3750_v44, %v3738_v27 }
 0x5f1   :  { %3456 = vmatprep.mubr.msk.f32.mxu1 %vm537_vm8, %v756_v46 }
 0x5f2   :  { %3457 = vmatmul.mubr.msk.f32.vlgmr.msra.gmra.mxu1 %vm537_vm8, %v757_v47 }
 0x5f3   :  { %3467 = vmatpush3.msra.mxu1 %v967_v31 }
 0x5f4   :  { %3468 = vmatprep.subr.mxu1 %v965_v6  ;;  %v3752_v51 = vpop.eup %3751 }
 0x5f5   :  { %3469 = vmatpush3.msra.mxu1 %v965_v6  ;;  %v963_v56 = vmul.f32 %v3752_v51, %v3740_v29 }
 0x5f6   :  { %3473 = vmatprep.subr.msk.mxu1 %vm445_vm5, %v1058_v48 }
 0x619   :  { %v956_v50 = vpop.xlane.xlu1 %955 }
 0x61a   :  { %3753 = vrcp.f32 %v956_v50 }
 0x61d   :  { %v1054_v58 = vpop.permute.xlu1 %1053 }
 0x627   :  { %v3754_v52 = vpop.eup %3753 }
 0x628   :  { %v962_v55 = vmul.f32 %v3754_v52, %v3742_v36 }
 0x62a   :  { %3470 = vmatprep.mubr.msk.f32.mxu1 %vm537_vm8, %v962_v55  ;;  %v3160_v55 = vld [vmem:[%s4555_s9 + $0x5] ss:$0 sm:$0xff] }
 0x62b   :  { %3471 = vmatmul.mubr.msk.f32.vlgmr.msra.gmra.mxu1 %vm537_vm8, %v963_v56 }
 0x62c   :  { %3474 = vmatpush3.xpose.msk.msra.mxu1 %vm445_vm5, %v1058_v48  ;;  %3477 = vmatprep.mubr.msk.f32.mxu1 %vm445_vm5, %v1052_v57 }
 0x62d   :  { %3475 = vmatprep.subr.msk.mxu1 %vm445_vm5, %v1056_v49 }
 0x630   :  { %3476 = vmatpush3.xpose.msk.msra.mxu1 %vm445_vm5, %v1056_v49 }
 0x631   :  { %3495 = vmatprep.subr.bf16.mxu1 %v3893_v1 }
 0x633   :  { %3478 = vmatmul.mubr.msk.f32.vlgmr.msra.gmra.mxu1 %vm445_vm5, %v1054_v58 }
 0x634   :  { %3499 = vmatprep.mubr.msk.bf16.mxu1 %vm3894_vm0, %v3893_v1 }
 0x683   :  { %v4181_v59 = vpop.f32.mrf.mxu1 }
 0x685   :  { %v4183_v60 = vpop.f32.mrf.mxu1 }
 0x6b2   :  { %v3458_v61 = vpop.f32.mrf.mxu1 }
 0x6b4   :  { %v838_v63 = vpop.f32.mrf.mxu1 }
 0x6b5   :  { %v3657_v16 = vpack.i.bf16 %v3458_v61, %v838_v63 }
 0x6eb   :  { %v3472_v0 = vpop.f32.mrf.mxu1 }
 0x6ed   :  { %v1042_v3 = vpop.f32.mrf.mxu1 }
 0x6ee   :  { %v3662_v18 = vpack.i.bf16 %v3472_v0, %v1042_v3 }
 0x6f3   :  { %v3479_v4 = vpop.f32.mrf.mxu1 }
 0x6f4   :  { %v1143_v5 = vmul.f32 0.35355338, %v3479_v4 }
 0x6f5   :  { %v1133_v7 = vpop.f32.mrf.mxu1 }
 0x6f6   :  { %v1142_v8 = vmul.f32 0.35355338, %v1133_v7  ;;  %v1145_v10 = vadd.f32 %v1143_v5, %v4128_v34 }
 0x6f8   :  { %v1149_v11 = vsel %vm537_vm8, %v1145_v10, -inf  ;;  %v1144_v13 = vadd.f32 %v1142_v8, %v4130_v37 }
 0x6f9   :  { %1150 = vmax.xlane.f32.xlu1 %v1149_v11 }
 0x6fa   :  { %v1146_v15 = vsel %vm537_vm8, %v1144_v13, -inf }
 0x6fb   :  { %1147 = vmax.xlane.f32.xlu0 %v1146_v15 }
 0x70a   :  { %1170 = vrot.lane.b32.xlu1 %v4098_v17, %s3899_s1 }
 0x70e   :  { %3658 = vrot.lane.b32.xlu1 %v3657_v16, %s3890_s24 }
 0x712   :  { %3663 = vrot.lane.b32.xlu1 %v3662_v18, %s3900_s7 }
 0x782   :  { %v1151_v20 = vpop.xlane.xlu1 %1150 }
 0x783   :  { %v1153_v21 = vsub.f32 %v1145_v10, %v1151_v20  ;;  %v3704_v20 = vld [vmem:[%s4551_s5] sm:$0xff]  }
 0x784   :  { %v1148_v22 = vpop.xlane.xlu0 %1147 }
 0x785   :  { %v1156_v23 = vmul.f32 1.442695, %v1153_v21  ;;  %v1152_v24 = vsub.f32 %v1144_v13, %v1148_v22 }
 0x786   :  { %v1171_v25 = vpop.permute.xlu1 %1170 }
 0x787   :  { %3755 = vpow2.f32 %v1156_v23  ;;  %v1154_v26 = vmul.f32 1.442695, %v1152_v24  ;;  %3480 = vmatprep.subr.mxu0 %v1171_v25 }
 0x788   :  { %3481 = vmatpush3.msra.mxu0 %v1171_v25 }
 0x789   :  { %3757 = vpow2.f32 %v1154_v26 }
 0x78a   :  { %v3659_v12 = vpop.permute.xlu1 %3658 }
 0x78b   :  { %v3661_v41 = vunpack.i.h.bf16 %v3659_v12  ;;  %v3660_v14 = vunpack.i.l.bf16 %v3659_v12 }
 0x78d   :  { %v1280_v44 = vsel %vm445_vm5, %v4181_v59, %v3661_v41  ;;  %v1279_v45 = vsel %vm445_vm5, %v4183_v60, %v3660_v14 }
 0x78e   :  { %v3664_v62 = vpop.permute.xlu1 %3663 }
 0x78f   :  { %v3666_v42 = vunpack.i.h.bf16 %v3664_v62  ;;  %v3665_v2 = vunpack.i.l.bf16 %v3664_v62 }
 0x791   :  { %v1281_v48 = vsel %vm537_vm8, %v1279_v45, %v3665_v2  ;;  %v1282_v49 = vsel %vm537_vm8, %v1280_v44, %v3666_v42 }
 0x794   :  { %v3756_v27 = vpop.eup %3755 }
 0x795   :  { %v1161_v17 = vsel %vm537_vm8, %v3756_v27, 0.0 }
 0x796   :  { %v3758_v28 = vpop.eup %3757  ;;  %1162 = vadd.xlane.f32.xlu0 %v1161_v17 }
 0x797   :  { %v1158_v29 = vsel %vm537_vm8, %v3758_v28, 0.0 }
 0x79a   :  { %1159 = vadd.xlane.f32.xlu0 %v1158_v29 }
 0x7b0   :  { %1168 = vrot.lane.b32.xlu0 %v4104_v19, %s3899_s1  ;;  %v3701_v19 = vld [vmem:[%s4550_s4 + $0x8] sm:$0xff]  }
 0x81f   :  { %v1163_v30 = vpop.xlane.xlu0 %1162 }
 0x820   :  { %3759 = vrcp.f32 %v1163_v30 }
 0x823   :  { %v1160_v31 = vpop.xlane.xlu0 %1159 }
 0x824   :  { %3761 = vrcp.f32 %v1160_v31 }
 0x827   :  { %v1169_v32 = vpop.permute.xlu0 %1168 }
 0x828   :  { %3482 = vmatprep.subr.mxu0 %v1169_v32 }
 0x829   :  { %3483 = vmatpush3.msra.mxu0 %v1169_v32  ;;  %v3165_v32 = vld [vmem:[%s4555_s9 + $0x7] ss:$0 sm:$0xff] }
 0x82a   :  { %3487 = vmatprep.subr.bf16.mxu0 %v3893_v1 }
 0x82d   :  { %v3760_v33 = vpop.eup %3759 }
 0x82e   :  { %v1167_v38 = vmul.f32 %v3760_v33, %v3756_v27 }
 0x831   :  { %v3762_v35 = vpop.eup %3761 }
 0x832   :  { %v1166_v36 = vmul.f32 %v3762_v35, %v3758_v28  ;;  %v3164_v28 = vld [vmem:[%s4555_s9 + $0x6] ss:$0 sm:$0xff] }
 0x834   :  { %3484 = vmatprep.mubr.msk.f32.mxu0 %vm537_vm8, %v1166_v36 }
 0x835   :  { %3485 = vmatmul.mubr.msk.f32.vlgmr.msra.gmra.mxu0 %vm537_vm8, %v1167_v38 }
 0x836   :  { %3491 = vmatprep.mubr.msk.bf16.mxu0 %vm3894_vm0, %v3893_v1  ;;  %3488 = vmatpush3.bf16.msra.mxu0 %v3701_v19  ;;  %v3705_v19 = vld [vmem:[%s4552_s6 + $0x18] sm:$0xff]  }
 0x837   :  { %3489 = vmatprep.subr.bf16.mxu0 %v3893_v1 }
 0x83a   :  { %3490 = vmatpush3.bf16.msra.mxu0 %v3702_v39  ;;  %v3706_v39 = vld [vmem:[%s4552_s6 + $0x10] sm:$0xff]  }
 0x83b   :  { %3503 = vmatprep.subr.bf16.mxu0 %v3893_v1 }
 0x8f5   :  { %v3486_v6 = vpop.f32.mrf.mxu0 }
 0x8f7   :  { %v1246_v40 = vpop.f32.mrf.mxu0 }
 0x8f8   :  { %v3667_v9 = vpack.i.bf16 %v3486_v6, %v1246_v40  ;;  %v3707_v6 = vld [vmem:[%s4552_s6 + $0x8] sm:$0xff]   ;;  %v3708_v40 = vld [vmem:[%s4552_s6] sm:$0xff]  }
 0x8fa   :  { %3668 = vrot.lane.b32.xlu0 %v3667_v9, %s3901_s12  ;;  %v3166_v9 = vld [vmem:[%s4555_s9 + $0x8] ss:$0 sm:$0xff] }
 0x96c   :  { %v3669_v43 = vpop.permute.xlu0 %3668 }
 0x96d   :  { %v3671_v46 = vunpack.i.h.bf16 %v3669_v43  ;;  %v3670_v47 = vunpack.i.l.bf16 %v3669_v43 }
 0x96f   :  { %v1285_v50 = vsel %vm1283_vm9, %v1282_v49, %v3671_v46  ;;  %v1284_v51 = vsel %vm1283_vm9, %v1281_v48, %v3670_v47 }
 0x970   :  { %v1286_v52 = vpack.c.bf16 %v1285_v50, %v1284_v51 }
 0x972   :  { %3492 = vmatmul.mubr.msk.bf16.vlgmr.msra.gmra.mxu0 %vm201_vm4, %v1286_v52 }
 0x973   :  { %3511 = vmatprep.mubr.msk.bf16.mxu0 %vm3894_vm0, %v3893_v1  ;;  %3504 = vmatpush3.bf16.msra.mxu0 %v3705_v19 }
 0x974   :  { %3505 = vmatprep.subr.bf16.mxu0 %v3893_v1 }
 0x977   :  { %3506 = vmatpush3.bf16.msra.mxu0 %v3706_v39 }
 0x978   :  { %3507 = vmatprep.subr.bf16.mxu0 %v3893_v1 }
 0x97b   :  { %3508 = vmatpush3.bf16.msra.mxu0 %v3707_v6  ;;  %v3176_v6 = vld [vmem:[%s4555_s9 + $0xa] ss:$0 sm:$0xff] }
 0x97c   :  { %3509 = vmatprep.subr.bf16.mxu0 %v3893_v1 }
 0x97f   :  { %3510 = vmatpush3.bf16.msra.mxu0 %v3708_v40 }
 0x980   :  { %3531 = vmatprep.subr.bf16.mxu0 %v3893_v1 }
 0xa32   :  { %v1345_v56 = vpop.f32.mrf.mxu0 }
 0xa33   :  { %v1346_v57 = vadd.f32 %v3160_v55, %v1345_v56 }
 0xa34   :  { %v3493_v58 = vpop.f32.mrf.mxu0 }
 0xa35   :  { %v1352_v59 = vadd.f32 %v1346_v57, %v4033_v53 }
 0xa36   :  { %v1348_v60 = vpop.f32.mrf.mxu0 }
 0xa37   :  { %v1349_v61 = vadd.f32 %v3160_v55, %v1348_v60  ;;  %v1354_v63 = vsel %vm201_vm4, %v1352_v59, 0.0 }
 0xa38   :  { %1355 = vadd.xlane.f32.xlu1 %v1354_v63  ;;  %v3494_v0 = vpop.f32.mrf.mxu0 }
 0xa39   :  { %v1353_v3 = vadd.f32 %v1349_v61, %v4035_v54  ;;  %v3703_v54 = vld [vmem:[%s4551_s5 + $0x8] sm:$0xff]  }
 0xa3a   :  { %3496 = vmatpush3.bf16.msra.mxu1 %v3703_v54 }
 0xa3b   :  { %v1357_v4 = vsel %vm201_vm4, %v1353_v3, 0.0  ;;  %3497 = vmatprep.subr.bf16.mxu1 %v3893_v1 }
 0xa3c   :  { %1358 = vadd.xlane.f32.xlu0 %v1357_v4 }
 0xa3e   :  { %3498 = vmatpush3.bf16.msra.mxu1 %v3704_v20 }
 0xa3f   :  { %3515 = vmatprep.subr.bf16.mxu1 %v3893_v1 }
 0xac1   :  { %v1356_v5 = vpop.xlane.xlu1 %1355 }
 0xac2   :  { %v1360_v7 = vmul.f32 0.03125, %v1356_v5 }
 0xac4   :  { %v1362_v8 = vsub.f32 %v1352_v59, %v1360_v7 }
 0xac5   :  { %v1359_v10 = vpop.xlane.xlu0 %1358 }
 0xac6   :  { %v1361_v11 = vmul.f32 0.03125, %v1359_v10  ;;  %v1364_v13 = vmul.f32 %v1362_v8, %v1362_v8 }
 0xac8   :  { %v1363_v15 = vsub.f32 %v1353_v3, %v1361_v11  ;;  %v1366_v53 = vsel %vm201_vm4, %v1364_v13, 0.0  ;;  %v3170_v3 = vld [vmem:[%s4555_s9 + $0x9] ss:$0 sm:$0xff] }
 0xac9   :  { %1367 = vadd.xlane.f32.xlu0 %v1366_v53 }
 0xaca   :  { %v1365_v16 = vmul.f32 %v1363_v15, %v1363_v15 }
 0xacc   :  { %v1369_v18 = vsel %vm201_vm4, %v1365_v16, 0.0 }
 0xacd   :  { %1370 = vadd.xlane.f32.xlu1 %v1369_v18 }
 0xb52   :  { %v1368_v21 = vpop.xlane.xlu0 %1367 }
 0xb53   :  { %v1372_v22 = vmul.f32 0.03125, %v1368_v21 }
 0xb55   :  { %v1374_v23 = vadd.f32 1e-12, %v1372_v22 }
 0xb56   :  { %v1371_v24 = vpop.xlane.xlu1 %1370 }
 0xb57   :  { %3763 = vrsqrt.f32 %v1374_v23  ;;  %v1373_v25 = vmul.f32 0.03125, %v1371_v24 }
 0xb59   :  { %v1375_v26 = vadd.f32 1e-12, %v1373_v25 }
 0xb5b   :  { %3765 = vrsqrt.f32 %v1375_v26 }
 0xb64   :  { %v3764_v27 = vpop.eup %3763 }
 0xb65   :  { %v1378_v17 = vmul.f32 %v3764_v27, %v1362_v8 }
 0xb67   :  { %v1385_v31 = vmul.f32 %v3164_v28, %v1378_v17  ;;  %v3709_v17 = vld [vmem:[%s4549_s3 + $0x38] sm:$0xff]  }
 0xb68   :  { %v3766_v29 = vpop.eup %3765 }
 0xb69   :  { %v1379_v30 = vmul.f32 %v3766_v29, %v1363_v15  ;;  %v1392_v35 = vadd.f32 %v3165_v32, %v1385_v31  ;;  %v3711_v29 = vld [vmem:[%s4549_s3 + $0x30] sm:$0xff]  }
 0xb6b   :  { %v1386_v33 = vmul.f32 %v3164_v28, %v1379_v30  ;;  %v3710_v28 = vld [vmem:[%s4549_s3 + $0x58] sm:$0xff]   ;;  %v3712_v30 = vld [vmem:[%s4549_s3 + $0x50] sm:$0xff]  }
 0xb6d   :  { %v1393_v36 = vadd.f32 %v3165_v32, %v1386_v33 }
 0xb6f   :  { %v1394_v38 = vpack.c.bf16 %v1393_v36, %v1392_v35 }
 0xb71   :  { %3500 = vmatmul.mubr.msk.bf16.vlgmr.msra.gmra.mxu1 %vm201_vm4, %v1394_v38 }
 0xb72   :  { %3519 = vmatprep.mubr.msk.bf16.mxu1 %vm3894_vm0, %v3893_v1  ;;  %3516 = vmatpush3.bf16.msra.mxu1 %v3709_v17 }
 0xb73   :  { %3517 = vmatprep.subr.bf16.mxu1 %v3893_v1 }
 0xb76   :  { %3518 = vmatpush3.bf16.msra.mxu1 %v3711_v29 }
 0xb77   :  { %3523 = vmatprep.subr.bf16.mxu1 %v3893_v1 }
 0xc31   :  { %v1453_v12 = vpop.f32.mrf.mxu1 }
 0xc32   :  { %v1454_v62 = vadd.f32 %v3166_v9, %v1453_v12 }
 0xc33   :  { %v3501_v41 = vpop.f32.mrf.mxu1 }
 0xc34   :  { %v1462_v14 = vmul.f32 0.044715, %v1454_v62  ;;  %v1460_v58 = vmul.f32 0.5, %v1454_v62 }
 0xc35   :  { %v1456_v42 = vpop.f32.mrf.mxu1 }
 0xc36   :  { %v1464_v2 = vmul.f32 %v1462_v14, %v1454_v62  ;;  %v1457_v43 = vadd.f32 %v3166_v9, %v1456_v42 }
 0xc37   :  { %v3502_v44 = vpop.f32.mrf.mxu1 }
 0xc38   :  { %v1466_v45 = vmul.f32 %v1464_v2, %v1454_v62  ;;  %v1463_v46 = vmul.f32 0.044715, %v1457_v43  ;;  %v1461_v59 = vmul.f32 0.5, %v1457_v43  ;;  %v3713_v2 = vld [vmem:[%s4549_s3 + $0x48] sm:$0xff]   ;;  %v3714_v44 = vld [vmem:[%s4549_s3 + $0x40] sm:$0xff]  }
 0xc3a   :  { %v1468_v47 = vadd.f32 %v1466_v45, %v1454_v62  ;;  %v1465_v48 = vmul.f32 %v1463_v46, %v1457_v43  ;;  %v3177_v62 = vld [vmem:[%s4555_s9 + $0xb] ss:$0 sm:$0xff]  ;;  %v3182_v45 = vld [vmem:[%s4555_s9 + $0xc] ss:$0 sm:$0xff] }
 0xc3c   :  { %v1470_v49 = vmul.f32 0.7978846, %v1468_v47  ;;  %v1467_v50 = vmul.f32 %v1465_v48, %v1457_v43 }
 0xc3e   :  { %3767 = vtanh.f32 %v1470_v49  ;;  %v1469_v51 = vadd.f32 %v1467_v50, %v1457_v43 }
 0xc40   :  { %v1471_v52 = vmul.f32 0.7978846, %v1469_v51 }
 0xc42   :  { %3769 = vtanh.f32 %v1471_v52 }
 0xc4b   :  { %v3768_v55 = vpop.eup %3767 }
 0xc4c   :  { %v1474_v56 = vadd.f32 1.0, %v3768_v55 }
 0xc4e   :  { %v1476_v61 = vmul.f32 %v1474_v56, %v1460_v58 }
 0xc4f   :  { %v3770_v57 = vpop.eup %3769 }
 0xc50   :  { %v1475_v60 = vadd.f32 1.0, %v3770_v57  ;;  %v3190_v57 = vld [vmem:[%s4555_s9 + $0xd] ss:$0 sm:$0xff] }
 0xc52   :  { %v1477_v63 = vmul.f32 %v1475_v60, %v1461_v59 }
 0xc54   :  { %v1478_v0 = vpack.c.bf16 %v1477_v63, %v1476_v61 }
 0xc56   :  { %3512 = vmatmul.mubr.msk.bf16.vlgmr.msra.gmra.mxu0 %vm1516_vm10, %v1478_v0 }
 0xc57   :  { %3535 = vmatprep.mubr.msk.bf16.mxu0 %vm3894_vm0, %v3893_v1  ;;  %3532 = vmatpush3.bf16.msra.mxu0 %v3710_v28 }
 0xc58   :  { %3533 = vmatprep.subr.bf16.mxu0 %v3893_v1 }
 0xc5b   :  { %3534 = vmatpush3.bf16.msra.mxu0 %v3712_v30 }
 0xd16   :  { %v1554_v4 = vpop.f32.mrf.mxu0 }
 0xd17   :  { %v1555_v5 = vadd.f32 %v3170_v3, %v1554_v4  ;;  %v3198_v4 = vld [vmem:[%s4555_s9 + $0xe] ss:$0 sm:$0xff] }
 0xd18   :  { %v3513_v7 = vpop.f32.mrf.mxu0 }
 0xd19   :  { %v1561_v8 = vadd.f32 %v1555_v5, %v1392_v35 }
 0xd1a   :  { %v1557_v10 = vpop.f32.mrf.mxu0 }
 0xd1b   :  { %v1558_v11 = vadd.f32 %v3170_v3, %v1557_v10  ;;  %v1563_v13 = vsel %vm201_vm4, %v1561_v8, 0.0 }
 0xd1c   :  { %1564 = vadd.xlane.f32.xlu0 %v1563_v13  ;;  %v3514_v15 = vpop.f32.mrf.mxu0 }
 0xd1d   :  { %v1562_v53 = vadd.f32 %v1558_v11, %v1393_v36 }
 0xd1f   :  { %v1566_v16 = vsel %vm201_vm4, %v1562_v53, 0.0 }
 0xd20   :  { %1567 = vadd.xlane.f32.xlu1 %v1566_v16 }
 0xda5   :  { %v1565_v18 = vpop.xlane.xlu0 %1564 }
 0xda6   :  { %v1569_v54 = vmul.f32 0.03125, %v1565_v18 }
 0xda8   :  { %v1571_v20 = vsub.f32 %v1561_v8, %v1569_v54 }
 0xda9   :  { %v1568_v21 = vpop.xlane.xlu1 %1567 }
 0xdaa   :  { %v1570_v22 = vmul.f32 0.03125, %v1568_v21  ;;  %v1573_v23 = vmul.f32 %v1571_v20, %v1571_v20 }
 0xdac   :  { %v1572_v24 = vsub.f32 %v1562_v53, %v1570_v22  ;;  %v1575_v25 = vsel %vm201_vm4, %v1573_v23, 0.0 }
 0xdad   :  { %1576 = vadd.xlane.f32.xlu0 %v1575_v25 }
 0xdae   :  { %v1574_v26 = vmul.f32 %v1572_v24, %v1572_v24 }
 0xdb0   :  { %v1578_v27 = vsel %vm201_vm4, %v1574_v26, 0.0 }
 0xdb1   :  { %1579 = vadd.xlane.f32.xlu1 %v1578_v27 }
 0xe36   :  { %v1577_v31 = vpop.xlane.xlu0 %1576 }
 0xe37   :  { %v1581_v32 = vmul.f32 0.03125, %v1577_v31 }
 0xe39   :  { %v1583_v33 = vadd.f32 1e-12, %v1581_v32 }
 0xe3a   :  { %v1580_v35 = vpop.xlane.xlu1 %1579 }
 0xe3b   :  { %3771 = vrsqrt.f32 %v1583_v33  ;;  %v1582_v36 = vmul.f32 0.03125, %v1580_v35 }
 0xe3d   :  { %v1584_v38 = vadd.f32 1e-12, %v1582_v36 }
 0xe3f   :  { %3773 = vrsqrt.f32 %v1584_v38 }
 0xe48   :  { %v3772_v19 = vpop.eup %3771 }
 0xe49   :  { %v1587_v39 = vmul.f32 %v3772_v19, %v1571_v20 }
 0xe4b   :  { %v1594_v12 = vmul.f32 %v3176_v6, %v1587_v39 }
 0xe4c   :  { %v3774_v40 = vpop.eup %3773 }
 0xe4d   :  { %v1588_v9 = vmul.f32 %v3774_v40, %v1572_v24  ;;  %v4298_v14 = vadd.f32 %v3177_v62, %v1594_v12 }
 0xe4f   :  { %v1595_v41 = vmul.f32 %v3176_v6, %v1588_v9 }
 0xe51   :  { %v4300_v42 = vadd.f32 %v3177_v62, %v1595_v41 }
 0xe53   :  { %v1603_v43 = vpack.c.bf16 %v4300_v42, %v4298_v14 }
 0xe55   :  { %3520 = vmatmul.mubr.msk.bf16.vlgmr.msra.gmra.mxu1 %vm201_vm4, %v1603_v43  ;;  %3536 = vmatmul.mubr.msk.bf16.vlgmr.msra.gmra.mxu0 %vm201_vm4, %v1603_v43 }
 0xe56   :  { %3524 = vmatpush3.bf16.msra.mxu1 %v3713_v2  ;;  %3527 = vmatprep.mubr.msk.bf16.mxu1 %vm3894_vm0, %v3893_v1 }
 0xe57   :  { %3525 = vmatprep.subr.bf16.mxu1 %v3893_v1 }
 0xe5a   :  { %3526 = vmatpush3.bf16.msra.mxu1 %v3714_v44 }
 0xe5d   :  { %3528 = vmatmul.mubr.msk.bf16.vlgmr.msra.gmra.mxu1 %vm201_vm4, %v1603_v43 }
 0xf15   :  { %v1663_v46 = vpop.f32.mrf.mxu1  ;;  %v1789_v47 = vpop.f32.mrf.mxu0 }
 0xf16   :  { %v4319_v48 = vadd.f32 %v3182_v45, %v1663_v46  ;;  %v4360_v7 = vadd.f32 %v3198_v4, %v1789_v47 }
 0xf17   :  { %v3521_v49 = vpop.f32.mrf.mxu1  ;;  %v3537_v50 = vpop.f32.mrf.mxu0 }
 0xf18   :  { %3543 = vmatprep.mubr.msk.f32.mxu1 %vm445_vm5, %v4319_v48 }
 0xf19   :  { %v1666_v51 = vpop.f32.mrf.mxu1  ;;  %v1792_v52 = vpop.f32.mrf.mxu0 }
 0xf1a   :  { %v4338_v3 = vadd.f32 %v3182_v45, %v1666_v51  ;;  %v4351_v5 = vadd.f32 %v3198_v4, %v1792_v52 }
 0xf1b   :  { %v3522_v55 = vpop.f32.mrf.mxu1  ;;  %v3538_v56 = vpop.f32.mrf.mxu0 }
 0xf1d   :  { %v1726_v58 = vpop.f32.mrf.mxu1 }
 0xf1e   :  { %v4326_v59 = vadd.f32 %v3190_v57, %v1726_v58 }
 0xf1f   :  { %v3529_v60 = vpop.f32.mrf.mxu1 }
 0xf20   :  { %1994 = vrot.lane.b32.xlu1 %v4326_v59, %s3896_s22 }
 0xf21   :  { %v1729_v61 = vpop.f32.mrf.mxu1 }
 0xf22   :  { %v4330_v63 = vadd.f32 %v3190_v57, %v1729_v61 }
 0xf23   :  { %v3530_v0 = vpop.f32.mrf.mxu1 }
 0xf24   :  { %1990 = vrot.lane.b32.xlu1 %v4319_v48, %s3896_s22  ;;  %1996 = vrot.lane.b32.xlu0 %v4330_v63, %s3896_s22 }
 0xf25   :  { %3539 = vmatprep.subr.msk.mxu1 %vm445_vm5, %v4330_v63 }
 0xf26   :  { %3540 = vmatpush3.xpose.msk.msra.mxu1 %vm445_vm5, %v4330_v63 }
 0xf27   :  { %3541 = vmatprep.subr.msk.mxu1 %vm445_vm5, %v4326_v59 }
 0xf28   :  { %1992 = vrot.lane.b32.xlu1 %v4338_v3, %s3896_s22  ;;  %2202 = vrot.lane.b32.xlu0 %v4330_v63, %s3897_s26 }
 0xf2a   :  { %3542 = vmatpush3.xpose.msk.msra.mxu1 %vm445_vm5, %v4326_v59 }
 0xf2b   :  { %3546 = vmatprep.subr.mxu1 %v4351_v5 }
 0xf2c   :  { %2196 = vrot.lane.b32.xlu1 %v4319_v48, %s3897_s26  ;;  %2200 = vrot.lane.b32.xlu0 %v4326_v59, %s3897_s26 }
 0xf2d   :  { %3544 = vmatmul.mubr.msk.f32.vlgmr.msra.gmra.mxu1 %vm445_vm5, %v4338_v3 }
 0xf2e   :  { %3547 = vmatpush3.msra.mxu1 %v4351_v5 }
 0xf2f   :  { %3548 = vmatprep.subr.mxu1 %v4360_v7 }
 0xf30   :  { %3549 = vmatpush3.msra.mxu1 %v4360_v7  ;;  %2198 = vrot.lane.b32.xlu0 %v4338_v3, %s3897_s26 }
 0xf92   :  { %v1995_v8 = vpop.permute.xlu1 %1994 }
 0xf96   :  { %v1991_v10 = vpop.permute.xlu1 %1990  ;;  %v1997_v11 = vpop.permute.xlu0 %1996 }
 0xf97   :  { %3553 = vmatprep.subr.msk.mxu0 %vm445_vm5, %v1997_v11  ;;  %3557 = vmatprep.mubr.msk.f32.mxu0 %vm445_vm5, %v1991_v10 }
 0xf98   :  { %3554 = vmatpush3.xpose.msk.msra.mxu0 %vm445_vm5, %v1997_v11 }
 0xf99   :  { %3555 = vmatprep.subr.msk.mxu0 %vm445_vm5, %v1995_v8 }
 0xf9a   :  { %v1993_v13 = vpop.permute.xlu1 %1992  ;;  %v2203_v15 = vpop.permute.xlu0 %2202 }
 0xf9c   :  { %3556 = vmatpush3.xpose.msk.msra.mxu0 %vm445_vm5, %v1995_v8 }
 0xf9d   :  { %3567 = vmatprep.subr.msk.mxu0 %vm445_vm5, %v2203_v15 }
 0xf9e   :  { %v2197_v53 = vpop.permute.xlu1 %2196  ;;  %v2201_v16 = vpop.permute.xlu0 %2200 }
 0xf9f   :  { %3558 = vmatmul.mubr.msk.f32.vlgmr.msra.gmra.mxu0 %vm445_vm5, %v1993_v13 }
 0xfa0   :  { %3568 = vmatpush3.xpose.msk.msra.mxu0 %vm445_vm5, %v2203_v15  ;;  %3571 = vmatprep.mubr.msk.f32.mxu0 %vm445_vm5, %v2197_v53 }
 0xfa1   :  { %3569 = vmatprep.subr.msk.mxu0 %vm445_vm5, %v2201_v16 }
 0xfa2   :  { %v2199_v18 = vpop.permute.xlu0 %2198 }
 0xfa4   :  { %3570 = vmatpush3.xpose.msk.msra.mxu0 %vm445_vm5, %v2201_v16 }
 0xfa7   :  { %3572 = vmatmul.mubr.msk.f32.vlgmr.msra.gmra.mxu0 %vm445_vm5, %v2199_v18 }
 0xfed   :  { %v3545_v54 = vpop.f32.mrf.mxu1 }
 0xfee   :  { %v1884_v20 = vmul.f32 0.35355338, %v3545_v54 }
 0xfef   :  { %v1874_v21 = vpop.f32.mrf.mxu1 }
 0xff0   :  { %v1883_v22 = vmul.f32 0.35355338, %v1874_v21  ;;  %v1886_v23 = vadd.f32 %v1884_v20, %v4128_v34 }
 0xff2   :  { %v1890_v24 = vsel %vm537_vm8, %v1886_v23, -inf  ;;  %v1885_v25 = vadd.f32 %v1883_v22, %v4130_v37 }
 0xff3   :  { %1891 = vmax.xlane.f32.xlu0 %v1890_v24 }
 0xff4   :  { %v1887_v26 = vsel %vm537_vm8, %v1885_v25, -inf }
 0xff5   :  { %1888 = vmax.xlane.f32.xlu1 %v1887_v26 }
0x105f   :  { %v3559_v27 = vpop.f32.mrf.mxu0 }
0x1060   :  { %v2082_v17 = vmul.f32 0.35355338, %v3559_v27 }
0x1061   :  { %v2072_v28 = vpop.f32.mrf.mxu0 }
0x1062   :  { %v2081_v29 = vmul.f32 0.35355338, %v2072_v28  ;;  %v2084_v30 = vadd.f32 %v2082_v17, %v4128_v34 }
0x1064   :  { %v2088_v31 = vsel %vm537_vm8, %v2084_v30, -inf  ;;  %v2083_v32 = vadd.f32 %v2081_v29, %v4130_v37 }
0x1065   :  { %2089 = vmax.xlane.f32.xlu1 %v2088_v31 }
0x1066   :  { %v2085_v33 = vsel %vm537_vm8, %v2083_v32, -inf }
0x1067   :  { %v3573_v35 = vpop.f32.mrf.mxu0  ;;  %2086 = vmax.xlane.f32.xlu0 %v2085_v33 }
0x1068   :  { %v2288_v36 = vmul.f32 0.35355338, %v3573_v35 }
0x1069   :  { %v2278_v38 = vpop.f32.mrf.mxu0 }
0x106a   :  { %v2287_v19 = vmul.f32 0.35355338, %v2278_v38  ;;  %v2290_v39 = vadd.f32 %v2288_v36, %v4128_v34 }
0x106c   :  { %v2294_v6 = vsel %vm537_vm8, %v2290_v39, -inf  ;;  %v2289_v40 = vadd.f32 %v2287_v19, %v4130_v37 }
0x106d   :  { %2295 = vmax.xlane.f32.xlu1 %v2294_v6 }
0x106e   :  { %v2291_v9 = vsel %vm537_vm8, %v2289_v40, -inf }
0x106f   :  { %2292 = vmax.xlane.f32.xlu0 %v2291_v9 }
0x107c   :  { %v1892_v62 = vpop.xlane.xlu0 %1891 }
0x107d   :  { %v1894_v2 = vsub.f32 %v1886_v23, %v1892_v62 }
0x107e   :  { %2109 = vrot.lane.b32.xlu1 %v4360_v7, %s3896_s22  ;;  %v1889_v12 = vpop.xlane.xlu1 %1888 }
0x107f   :  { %v1893_v41 = vsub.f32 %v1885_v25, %v1889_v12  ;;  %v1897_v44 = vmul.f32 1.442695, %v1894_v2 }
0x1081   :  { %v1895_v43 = vmul.f32 1.442695, %v1893_v41 }
0x1082   :  { %2315 = vrot.lane.b32.xlu1 %v4351_v5, %s3897_s26 }
0x1083   :  { %3775 = vpow2.f32 %v1895_v43 }
0x1084   :  { %3777 = vpow2.f32 %v1897_v44 }
0x1085   :  { %2111 = vrot.lane.b32.xlu0 %v4351_v5, %s3896_s22 }
0x1090   :  { %v3776_v45 = vpop.eup %3775 }
0x1091   :  { %v3778_v46 = vpop.eup %3777  ;;  %v1899_v47 = vsel %vm537_vm8, %v3776_v45, 0.0 }
0x1092   :  { %v1902_v49 = vsel %vm537_vm8, %v3778_v46, 0.0 }
0x10a4   :  { %1900 = vadd.xlane.f32.xlu0 %v1899_v47 }
0x10a6   :  { %1903 = vadd.xlane.f32.xlu1 %v1902_v49 }
0x10ee   :  { %v2090_v50 = vpop.xlane.xlu1 %2089 }
0x10ef   :  { %v2092_v51 = vsub.f32 %v2084_v30, %v2090_v50 }
0x10f0   :  { %v2087_v52 = vpop.xlane.xlu0 %2086 }
0x10f1   :  { %v2095_v55 = vmul.f32 1.442695, %v2092_v51  ;;  %v2091_v56 = vsub.f32 %v2083_v32, %v2087_v52 }
0x10f3   :  { %3779 = vpow2.f32 %v2095_v55  ;;  %v2093_v57 = vmul.f32 1.442695, %v2091_v56 }
0x10f5   :  { %3781 = vpow2.f32 %v2093_v57 }
0x10f6   :  { %v2296_v58 = vpop.xlane.xlu1 %2295 }
0x10f7   :  { %v2298_v60 = vsub.f32 %v2290_v39, %v2296_v58 }
0x10f8   :  { %v2293_v61 = vpop.xlane.xlu0 %2292 }
0x10f9   :  { %v2301_v0 = vmul.f32 1.442695, %v2298_v60  ;;  %v2297_v4 = vsub.f32 %v2289_v40, %v2293_v61 }
0x10fa   :  { %v2110_v21 = vpop.permute.xlu1 %2109 }
0x10fb   :  { %3783 = vpow2.f32 %v2301_v0  ;;  %v2299_v8 = vmul.f32 1.442695, %v2297_v4 }
0x10fc   :  { %v2112_v10 = vpop.permute.xlu0 %2111 }
0x10fd   :  { %3785 = vpow2.f32 %v2299_v8  ;;  %3560 = vmatprep.subr.mxu1 %v2112_v10 }
0x10fe   :  { %v2316_v22 = vpop.permute.xlu1 %2315 }
0x1100   :  { %v3780_v11 = vpop.eup %3779 }
0x1101   :  { %v2100_v13 = vsel %vm537_vm8, %v3780_v11, 0.0 }
0x1102   :  { %v3782_v15 = vpop.eup %3781  ;;  %2101 = vadd.xlane.f32.xlu1 %v2100_v13 }
0x1103   :  { %v2097_v53 = vsel %vm537_vm8, %v3782_v15, 0.0 }
0x1104   :  { %2098 = vadd.xlane.f32.xlu0 %v2097_v53 }
0x1108   :  { %v3784_v16 = vpop.eup %3783 }
0x1109   :  { %v2306_v18 = vsel %vm537_vm8, %v3784_v16, 0.0 }
0x110a   :  { %v3786_v54 = vpop.eup %3785  ;;  %2307 = vadd.xlane.f32.xlu1 %v2306_v18 }
0x110b   :  { %v2303_v20 = vsel %vm537_vm8, %v3786_v54, 0.0 }
0x110c   :  { %2304 = vadd.xlane.f32.xlu0 %v2303_v20  ;;  %v3716_v20 = vld [vmem:[%s4550_s4 + $0x10] sm:$0xff]  }
0x111b   :  { %2406 = vrot.lane.b32.xlu1 %v4330_v63, %s3899_s1 }
0x111f   :  { %2400 = vrot.lane.b32.xlu1 %v4319_v48, %s3899_s1 }
0x1122   :  { %2313 = vrot.lane.b32.xlu0 %v4360_v7, %s3897_s26 }
0x1126   :  { %2404 = vrot.lane.b32.xlu0 %v4326_v59, %s3899_s1 }
0x112a   :  { %2402 = vrot.lane.b32.xlu0 %v4338_v3, %s3899_s1 }
0x112d   :  { %v1901_v23 = vpop.xlane.xlu0 %1900 }
0x112e   :  { %3787 = vrcp.f32 %v1901_v23 }
0x112f   :  { %v1904_v24 = vpop.xlane.xlu1 %1903 }
0x1130   :  { %3789 = vrcp.f32 %v1904_v24 }
0x113b   :  { %v3788_v25 = vpop.eup %3787 }
0x113c   :  { %v1907_v63 = vmul.f32 %v3788_v25, %v3776_v45 }
0x113d   :  { %v3790_v26 = vpop.eup %3789 }
0x113e   :  { %3550 = vmatprep.mubr.msk.f32.mxu1 %vm537_vm8, %v1907_v63  ;;  %v1908_v48 = vmul.f32 %v3790_v26, %v3778_v46 }
0x1140   :  { %3551 = vmatmul.mubr.msk.f32.vlgmr.msra.gmra.mxu1 %vm537_vm8, %v1908_v48 }
0x1141   :  { %3561 = vmatpush3.msra.mxu1 %v2112_v10 }
0x1142   :  { %3562 = vmatprep.subr.mxu1 %v2110_v21 }
0x1143   :  { %3563 = vmatpush3.msra.mxu1 %v2110_v21 }
0x1144   :  { %3574 = vmatprep.subr.mxu1 %v2316_v22 }
0x118b   :  { %v2102_v59 = vpop.xlane.xlu1 %2101 }
0x118c   :  { %3791 = vrcp.f32 %v2102_v59 }
0x118d   :  { %v2099_v3 = vpop.xlane.xlu0 %2098 }
0x118e   :  { %3793 = vrcp.f32 %v2099_v3 }
0x1193   :  { %v2308_v27 = vpop.xlane.xlu1 %2307 }
0x1194   :  { %3795 = vrcp.f32 %v2308_v27 }
0x1195   :  { %v2305_v17 = vpop.xlane.xlu0 %2304 }
0x1196   :  { %3797 = vrcp.f32 %v2305_v17 }
0x1197   :  { %v2407_v33 = vpop.permute.xlu1 %2406 }
0x1199   :  { %v3792_v28 = vpop.eup %3791  ;;  %v2314_v32 = vpop.permute.xlu0 %2313 }
0x119a   :  { %v2106_v31 = vmul.f32 %v3792_v28, %v3780_v11 }
0x119b   :  { %v3794_v29 = vpop.eup %3793  ;;  %v2401_v39 = vpop.permute.xlu1 %2400 }
0x119c   :  { %v2105_v30 = vmul.f32 %v3794_v29, %v3782_v15 }
0x119d   :  { %v2405_v6 = vpop.permute.xlu0 %2404 }
0x119e   :  { %3564 = vmatprep.mubr.msk.f32.mxu1 %vm537_vm8, %v2105_v30 }
0x119f   :  { %3565 = vmatmul.mubr.msk.f32.vlgmr.msra.gmra.mxu1 %vm537_vm8, %v2106_v31 }
0x11a0   :  { %3575 = vmatpush3.msra.mxu1 %v2316_v22 }
0x11a1   :  { %3576 = vmatprep.subr.mxu1 %v2314_v32  ;;  %v3796_v35 = vpop.eup %3795  ;;  %v2403_v40 = vpop.permute.xlu0 %2402 }
0x11a2   :  { %3577 = vmatpush3.msra.mxu1 %v2314_v32  ;;  %v2312_v19 = vmul.f32 %v3796_v35, %v3784_v16 }
0x11a3   :  { %v3798_v36 = vpop.eup %3797  ;;  %3581 = vmatprep.subr.msk.mxu1 %vm445_vm5, %v2407_v33 }
0x11a4   :  { %v2311_v38 = vmul.f32 %v3798_v36, %v3786_v54  ;;  %v3230_v36 = vld [vmem:[%s4555_s9 + $0xf] ss:$0 sm:$0xff] }
0x11a6   :  { %3578 = vmatprep.mubr.msk.f32.mxu1 %vm537_vm8, %v2311_v38 }
0x11a7   :  { %3579 = vmatmul.mubr.msk.f32.vlgmr.msra.gmra.mxu1 %vm537_vm8, %v2312_v19 }
0x11a8   :  { %3582 = vmatpush3.xpose.msk.msra.mxu1 %vm445_vm5, %v2407_v33  ;;  %3585 = vmatprep.mubr.msk.f32.mxu1 %vm445_vm5, %v2401_v39 }
0x11a9   :  { %3583 = vmatprep.subr.msk.mxu1 %vm445_vm5, %v2405_v6 }
0x11ac   :  { %3584 = vmatpush3.xpose.msk.msra.mxu1 %vm445_vm5, %v2405_v6 }
0x11ad   :  { %3603 = vmatprep.subr.bf16.mxu1 %v3893_v1 }
0x11af   :  { %3586 = vmatmul.mubr.msk.f32.vlgmr.msra.gmra.mxu1 %vm445_vm5, %v2403_v40 }
0x11b0   :  { %3607 = vmatprep.mubr.msk.bf16.mxu1 %vm3894_vm0, %v3893_v1 }
0x1200   :  { %v4430_v9 = vpop.f32.mrf.mxu1 }
0x1202   :  { %v4432_v12 = vpop.f32.mrf.mxu1 }
0x125f   :  { %v3566_v62 = vpop.f32.mrf.mxu1 }
0x1261   :  { %v2187_v41 = vpop.f32.mrf.mxu1 }
0x1262   :  { %v3672_v2 = vpack.i.bf16 %v3566_v62, %v2187_v41 }
0x1267   :  { %v3580_v43 = vpop.f32.mrf.mxu1 }
0x1269   :  { %v2391_v44 = vpop.f32.mrf.mxu1 }
0x126a   :  { %v3677_v45 = vpack.i.bf16 %v3580_v43, %v2391_v44 }
0x126f   :  { %v3587_v46 = vpop.f32.mrf.mxu1 }
0x1270   :  { %v2492_v47 = vmul.f32 0.35355338, %v3587_v46 }
0x1271   :  { %v2482_v49 = vpop.f32.mrf.mxu1 }
0x1272   :  { %v2491_v50 = vmul.f32 0.35355338, %v2482_v49  ;;  %v2494_v51 = vadd.f32 %v2492_v47, %v4128_v34 }
0x1274   :  { %v2498_v52 = vsel %vm537_vm8, %v2494_v51, -inf  ;;  %v2493_v55 = vadd.f32 %v2491_v50, %v4130_v37 }
0x1275   :  { %2499 = vmax.xlane.f32.xlu0 %v2498_v52 }
0x1276   :  { %v2495_v56 = vsel %vm537_vm8, %v2493_v55, -inf }
0x1277   :  { %2496 = vmax.xlane.f32.xlu1 %v2495_v56 }
0x12fe   :  { %v2500_v57 = vpop.xlane.xlu0 %2499 }
0x12ff   :  { %v2502_v58 = vsub.f32 %v2494_v51, %v2500_v57 }
0x1300   :  { %v2497_v60 = vpop.xlane.xlu1 %2496 }
0x1301   :  { %v2505_v61 = vmul.f32 1.442695, %v2502_v58  ;;  %v2501_v0 = vsub.f32 %v2493_v55, %v2497_v60  ;;  %v3718_v55 = vld [vmem:[%s4551_s5 + $0x10] sm:$0xff]  }
0x1303   :  { %3799 = vpow2.f32 %v2505_v61  ;;  %v2503_v4 = vmul.f32 1.442695, %v2501_v0 }
0x1305   :  { %3801 = vpow2.f32 %v2503_v4 }
0x1310   :  { %v3800_v8 = vpop.eup %3799 }
0x1311   :  { %v2510_v10 = vsel %vm537_vm8, %v3800_v8, 0.0 }
0x1312   :  { %v3802_v34 = vpop.eup %3801  ;;  %2511 = vadd.xlane.f32.xlu1 %v2510_v10  ;;  %v3234_v10 = vld [vmem:[%s4555_s9 + $0x10] ss:$0 sm:$0xff] }
0x1313   :  { %v2507_v11 = vsel %vm537_vm8, %v3802_v34, 0.0 }
0x1314   :  { %2508 = vadd.xlane.f32.xlu0 %v2507_v11 }
0x1323   :  { %2517 = vrot.lane.b32.xlu1 %v4360_v7, %s3899_s1 }
0x1327   :  { %3673 = vrot.lane.b32.xlu1 %v3672_v2, %s3890_s24 }
0x132a   :  { %2519 = vrot.lane.b32.xlu0 %v4351_v5, %s3899_s1  ;;  %v3715_v5 = vld [vmem:[%s4550_s4 + $0x18] sm:$0xff]  }
0x132e   :  { %3678 = vrot.lane.b32.xlu0 %v3677_v45, %s3900_s7 }
0x139b   :  { %v2512_v37 = vpop.xlane.xlu1 %2511 }
0x139c   :  { %3803 = vrcp.f32 %v2512_v37 }
0x139d   :  { %v2509_v13 = vpop.xlane.xlu0 %2508 }
0x139e   :  { %3805 = vrcp.f32 %v2509_v13  ;;  %v3235_v13 = vld [vmem:[%s4555_s9 + $0x11] ss:$0 sm:$0xff] }
0x139f   :  { %v2518_v53 = vpop.permute.xlu1 %2517 }
0x13a1   :  { %v2520_v15 = vpop.permute.xlu0 %2519 }
0x13a2   :  { %3588 = vmatprep.subr.mxu0 %v2520_v15 }
0x13a3   :  { %3589 = vmatpush3.msra.mxu0 %v2520_v15  ;;  %v3674_v24 = vpop.permute.xlu1 %3673 }
0x13a4   :  { %3590 = vmatprep.subr.mxu0 %v2518_v53  ;;  %v3676_v25 = vunpack.i.h.bf16 %v3674_v24  ;;  %v3675_v63 = vunpack.i.l.bf16 %v3674_v24 }
0x13a5   :  { %3591 = vmatpush3.msra.mxu0 %v2518_v53  ;;  %v3679_v26 = vpop.permute.xlu0 %3678 }
0x13a6   :  { %3595 = vmatprep.subr.bf16.mxu0 %v3893_v1  ;;  %v3681_v48 = vunpack.i.h.bf16 %v3679_v26  ;;  %v3680_v59 = vunpack.i.l.bf16 %v3679_v26  ;;  %v2629_v3 = vsel %vm445_vm5, %v4430_v9, %v3676_v25  ;;  %v2628_v27 = vsel %vm445_vm5, %v4432_v12, %v3675_v63 }
0x13a8   :  { %v2630_v30 = vsel %vm537_vm8, %v2628_v27, %v3680_v59  ;;  %v2631_v31 = vsel %vm537_vm8, %v2629_v3, %v3681_v48 }
0x13a9   :  { %v3804_v7 = vpop.eup %3803 }
0x13aa   :  { %v2516_v54 = vmul.f32 %v3804_v7, %v3800_v8 }
0x13ab   :  { %v3806_v16 = vpop.eup %3805 }
0x13ac   :  { %v2515_v18 = vmul.f32 %v3806_v16, %v3802_v34 }
0x13ae   :  { %3592 = vmatprep.mubr.msk.f32.mxu0 %vm537_vm8, %v2515_v18  ;;  %v3719_v18 = vld [vmem:[%s4552_s6 + $0x38] sm:$0xff]  }
0x13af   :  { %3593 = vmatmul.mubr.msk.f32.vlgmr.msra.gmra.mxu0 %vm537_vm8, %v2516_v54  ;;  %v3720_v54 = vld [vmem:[%s4552_s6 + $0x30] sm:$0xff]  }
0x13b0   :  { %3599 = vmatprep.mubr.msk.bf16.mxu0 %vm3894_vm0, %v3893_v1  ;;  %3596 = vmatpush3.bf16.msra.mxu0 %v3715_v5  ;;  %v3721_v5 = vld [vmem:[%s4552_s6 + $0x28] sm:$0xff]  }
0x13b1   :  { %3597 = vmatprep.subr.bf16.mxu0 %v3893_v1 }
0x13b4   :  { %3598 = vmatpush3.bf16.msra.mxu0 %v3716_v20  ;;  %v3722_v20 = vld [vmem:[%s4552_s6 + $0x20] sm:$0xff]  }
0x13b5   :  { %3611 = vmatprep.subr.bf16.mxu0 %v3893_v1 }
0x146f   :  { %v3594_v21 = vpop.f32.mrf.mxu0 }
0x1471   :  { %v2595_v22 = vpop.f32.mrf.mxu0 }
0x1472   :  { %v3682_v23 = vpack.i.bf16 %v3594_v21, %v2595_v22  ;;  %v3240_v21 = vld [vmem:[%s4555_s9 + $0x12] ss:$0 sm:$0xff] }
0x1474   :  { %3683 = vrot.lane.b32.xlu1 %v3682_v23, %s3901_s12 }
0x14e6   :  { %v3684_v17 = vpop.permute.xlu1 %3683 }
0x14e7   :  { %v3686_v28 = vunpack.i.h.bf16 %v3684_v17  ;;  %v3685_v29 = vunpack.i.l.bf16 %v3684_v17 }
0x14e9   :  { %v2632_v32 = vsel %vm1283_vm9, %v2630_v30, %v3685_v29  ;;  %v2633_v33 = vsel %vm1283_vm9, %v2631_v31, %v3686_v28 }
0x14ea   :  { %v2634_v35 = vpack.c.bf16 %v2633_v33, %v2632_v32 }
0x14ec   :  { %3600 = vmatmul.mubr.msk.bf16.vlgmr.msra.gmra.mxu0 %vm201_vm4, %v2634_v35 }
0x14ed   :  { %3619 = vmatprep.mubr.msk.bf16.mxu0 %vm3894_vm0, %v3893_v1  ;;  %3612 = vmatpush3.bf16.msra.mxu0 %v3719_v18 }
0x14ee   :  { %3613 = vmatprep.subr.bf16.mxu0 %v3893_v1 }
0x14f1   :  { %3614 = vmatpush3.bf16.msra.mxu0 %v3720_v54 }
0x14f2   :  { %3615 = vmatprep.subr.bf16.mxu0 %v3893_v1 }
0x14f5   :  { %3616 = vmatpush3.bf16.msra.mxu0 %v3721_v5 }
0x14f6   :  { %3617 = vmatprep.subr.bf16.mxu0 %v3893_v1 }
0x14f9   :  { %3618 = vmatpush3.bf16.msra.mxu0 %v3722_v20  ;;  %v3259_v20 = vld [vmem:[%s4555_s9 + $0x15] ss:$0 sm:$0xff] }
0x15ac   :  { %v2694_v38 = vpop.f32.mrf.mxu0 }
0x15ad   :  { %v2695_v19 = vadd.f32 %v3230_v36, %v2694_v38 }
0x15ae   :  { %v3601_v39 = vpop.f32.mrf.mxu0 }
0x15af   :  { %v2701_v6 = vadd.f32 %v2695_v19, %v4298_v14 }
0x15b0   :  { %v2697_v40 = vpop.f32.mrf.mxu0 }
0x15b1   :  { %v2698_v9 = vadd.f32 %v3230_v36, %v2697_v40  ;;  %v2703_v12 = vsel %vm201_vm4, %v2701_v6, 0.0 }
0x15b2   :  { %2704 = vadd.xlane.f32.xlu0 %v2703_v12  ;;  %v3602_v62 = vpop.f32.mrf.mxu0  ;;  %v3252_v12 = vld [vmem:[%s4555_s9 + $0x13] ss:$0 sm:$0xff] }
0x15b3   :  { %v2702_v41 = vadd.f32 %v2698_v9, %v4300_v42  ;;  %v3717_v42 = vld [vmem:[%s4551_s5 + $0x18] sm:$0xff]  }
0x15b4   :  { %3604 = vmatpush3.bf16.msra.mxu1 %v3717_v42 }
0x15b5   :  { %v2706_v2 = vsel %vm201_vm4, %v2702_v41, 0.0  ;;  %3605 = vmatprep.subr.bf16.mxu1 %v3893_v1 }
0x15b6   :  { %2707 = vadd.xlane.f32.xlu1 %v2706_v2 }
0x15b8   :  { %3606 = vmatpush3.bf16.msra.mxu1 %v3718_v55 }
0x15b9   :  { %3623 = vmatprep.subr.bf16.mxu1 %v3893_v1 }
0x163b   :  { %v2705_v43 = vpop.xlane.xlu0 %2704 }
0x163c   :  { %v2709_v44 = vmul.f32 0.03125, %v2705_v43 }
0x163e   :  { %v2711_v45 = vsub.f32 %v2701_v6, %v2709_v44 }
0x163f   :  { %v2708_v46 = vpop.xlane.xlu1 %2707 }
0x1640   :  { %v2710_v47 = vmul.f32 0.03125, %v2708_v46  ;;  %v2713_v49 = vmul.f32 %v2711_v45, %v2711_v45 }
0x1642   :  { %v2712_v50 = vsub.f32 %v2702_v41, %v2710_v47  ;;  %v2715_v14 = vsel %vm201_vm4, %v2713_v49, 0.0 }
0x1643   :  { %2716 = vadd.xlane.f32.xlu0 %v2715_v14 }
0x1644   :  { %v2714_v51 = vmul.f32 %v2712_v50, %v2712_v50 }
0x1646   :  { %v2718_v52 = vsel %vm201_vm4, %v2714_v51, 0.0 }
0x1647   :  { %2719 = vadd.xlane.f32.xlu0 %v2718_v52 }
0x16cc   :  { %v2717_v56 = vpop.xlane.xlu0 %2716 }
0x16cd   :  { %v2721_v57 = vmul.f32 0.03125, %v2717_v56 }
0x16cf   :  { %v2723_v58 = vadd.f32 1e-12, %v2721_v57 }
0x16d0   :  { %v2720_v60 = vpop.xlane.xlu0 %2719 }
0x16d1   :  { %3807 = vrsqrt.f32 %v2723_v58  ;;  %v2722_v61 = vmul.f32 0.03125, %v2720_v60 }
0x16d3   :  { %v2724_v0 = vadd.f32 1e-12, %v2722_v61 }
0x16d5   :  { %3809 = vrsqrt.f32 %v2724_v0  ;;  %v3723_v0 = vld [vmem:[#allocation4 + $0x8] sm:$0xff]  }
0x16de   :  { %v3808_v4 = vpop.eup %3807 }
0x16df   :  { %v2727_v8 = vmul.f32 %v3808_v4, %v2711_v45  ;;  %v3724_v4 = vld [vmem:[#allocation4] sm:$0xff]  }
0x16e1   :  { %v2734_v37 = vmul.f32 %v3234_v10, %v2727_v8 }
0x16e2   :  { %v3810_v34 = vpop.eup %3809 }
0x16e3   :  { %v2728_v11 = vmul.f32 %v3810_v34, %v2712_v50  ;;  %v2741_v53 = vadd.f32 %v3235_v13, %v2734_v37 }
0x16e5   :  { %v2735_v15 = vmul.f32 %v3234_v10, %v2728_v11 }
0x16e7   :  { %v2742_v7 = vadd.f32 %v3235_v13, %v2735_v15 }
0x16e9   :  { %v2743_v16 = vpack.c.bf16 %v2742_v7, %v2741_v53 }
0x16eb   :  { %3608 = vmatmul.mubr.msk.bf16.vlgmr.msra.gmra.mxu1 %vm201_vm4, %v2743_v16  ;;  %v3258_v16 = vld [vmem:[%s4555_s9 + $0x14] ss:$0 sm:$0xff] }
0x16ec   :  { %3627 = vmatprep.mubr.msk.bf16.mxu1 %vm3894_vm0, %v3893_v1  ;;  %3624 = vmatpush3.bf16.msra.mxu1 %v3723_v0 }
0x16ed   :  { %3625 = vmatprep.subr.bf16.mxu1 %v3893_v1 }
0x16f0   :  { %3626 = vmatpush3.bf16.msra.mxu1 %v3724_v4 }
0x16f1   :  { %3631 = vmatprep.subr.bf16.mxu1 %v3893_v1 }
0x17ab   :  { %v2803_v22 = vpop.f32.mrf.mxu1 }
0x17ac   :  { %v2804_v23 = vadd.f32 %v3240_v21, %v2803_v22 }
0x17ad   :  { %v3609_v24 = vpop.f32.mrf.mxu1 }
0x17ae   :  { %v2812_v25 = vmul.f32 0.044715, %v2804_v23  ;;  %v2810_v38 = vmul.f32 0.5, %v2804_v23 }
0x17af   :  { %v2806_v63 = vpop.f32.mrf.mxu1 }
0x17b0   :  { %v2814_v26 = vmul.f32 %v2812_v25, %v2804_v23  ;;  %v2807_v48 = vadd.f32 %v3240_v21, %v2806_v63  ;;  %v3725_v63 = vld [vmem:[#allocation6 + $0x8] sm:$0xff]  }
0x17b1   :  { %v3610_v59 = vpop.f32.mrf.mxu1 }
0x17b2   :  { %v2816_v3 = vmul.f32 %v2814_v26, %v2804_v23  ;;  %v2813_v27 = vmul.f32 0.044715, %v2807_v48  ;;  %v2811_v19 = vmul.f32 0.5, %v2807_v48  ;;  %v3726_v26 = vld [vmem:[#allocation6] sm:$0xff]  }
0x17b4   :  { %v2818_v17 = vadd.f32 %v2816_v3, %v2804_v23  ;;  %v2815_v28 = vmul.f32 %v2813_v27, %v2807_v48 }
0x17b6   :  { %v2820_v29 = vmul.f32 0.7978846, %v2818_v17  ;;  %v2817_v30 = vmul.f32 %v2815_v28, %v2807_v48 }
0x17b8   :  { %3811 = vtanh.f32 %v2820_v29  ;;  %v2819_v31 = vadd.f32 %v2817_v30, %v2807_v48  ;;  %v3260_v48 = vld [vmem:[%s4555_s9 + $0x16] ss:$0 sm:$0xff] }
0x17ba   :  { %v2821_v32 = vmul.f32 0.7978846, %v2819_v31 }
0x17bc   :  { %3813 = vtanh.f32 %v2821_v32 }
0x17c5   :  { %v3812_v33 = vpop.eup %3811 }
0x17c6   :  { %v2824_v35 = vadd.f32 1.0, %v3812_v33 }
0x17c8   :  { %v2826_v6 = vmul.f32 %v2824_v35, %v2810_v38 }
0x17c9   :  { %v3814_v36 = vpop.eup %3813 }
0x17ca   :  { %v2825_v39 = vadd.f32 1.0, %v3814_v36 }
0x17cc   :  { %v2827_v40 = vmul.f32 %v2825_v39, %v2811_v19 }
0x17ce   :  { %v2828_v9 = vpack.c.bf16 %v2827_v40, %v2826_v6 }
0x17d0   :  { %3620 = vmatmul.mubr.msk.bf16.vlgmr.msra.gmra.mxu0 %vm1516_vm10, %v2828_v9 }
0x1890   :  { %v2904_v62 = vpop.f32.mrf.mxu0 }
0x1891   :  { %v2905_v41 = vadd.f32 %v3252_v12, %v2904_v62 }
0x1892   :  { %v3621_v2 = vpop.f32.mrf.mxu0 }
0x1893   :  { %v2911_v43 = vadd.f32 %v2905_v41, %v2741_v53 }
0x1894   :  { %v2907_v44 = vpop.f32.mrf.mxu0 }
0x1895   :  { %v2908_v45 = vadd.f32 %v3252_v12, %v2907_v44  ;;  %v2913_v46 = vsel %vm201_vm4, %v2911_v43, 0.0 }
0x1896   :  { %2914 = vadd.xlane.f32.xlu0 %v2913_v46  ;;  %v3622_v47 = vpop.f32.mrf.mxu0 }
0x1897   :  { %v2912_v49 = vadd.f32 %v2908_v45, %v2742_v7 }
0x1899   :  { %v2916_v50 = vsel %vm201_vm4, %v2912_v49, 0.0 }
0x189a   :  { %2917 = vadd.xlane.f32.xlu1 %v2916_v50 }
0x191f   :  { %v2915_v14 = vpop.xlane.xlu0 %2914 }
0x1920   :  { %v2919_v51 = vmul.f32 0.03125, %v2915_v14 }
0x1922   :  { %v2921_v52 = vsub.f32 %v2911_v43, %v2919_v51 }
0x1923   :  { %v2918_v42 = vpop.xlane.xlu1 %2917 }
0x1924   :  { %v2920_v55 = vmul.f32 0.03125, %v2918_v42  ;;  %v2923_v56 = vmul.f32 %v2921_v52, %v2921_v52 }
0x1926   :  { %v2922_v57 = vsub.f32 %v2912_v49, %v2920_v55  ;;  %v2925_v58 = vsel %vm201_vm4, %v2923_v56, 0.0 }
0x1927   :  { %2926 = vadd.xlane.f32.xlu0 %v2925_v58 }
0x1928   :  { %v2924_v60 = vmul.f32 %v2922_v57, %v2922_v57 }
0x192a   :  { %v2928_v61 = vsel %vm201_vm4, %v2924_v60, 0.0 }
0x192b   :  { %2929 = vadd.xlane.f32.xlu1 %v2928_v61 }
0x19b0   :  { %v2927_v8 = vpop.xlane.xlu0 %2926 }
0x19b1   :  { %v2931_v10 = vmul.f32 0.03125, %v2927_v8 }
0x19b3   :  { %v2933_v34 = vadd.f32 1e-12, %v2931_v10 }
0x19b4   :  { %v2930_v11 = vpop.xlane.xlu1 %2929 }
0x19b5   :  { %3815 = vrsqrt.f32 %v2933_v34  ;;  %v2932_v37 = vmul.f32 0.03125, %v2930_v11 }
0x19b7   :  { %v2934_v13 = vadd.f32 1e-12, %v2932_v37 }
0x19b9   :  { %3817 = vrsqrt.f32 %v2934_v13 }
0x19c2   :  { %v3816_v15 = vpop.eup %3815 }
0x19c3   :  { %v2937_v53 = vmul.f32 %v3816_v15, %v2921_v52 }
0x19c5   :  { %v2944_v54 = vmul.f32 %v3258_v16, %v2937_v53 }
0x19c6   :  { %v3818_v7 = vpop.eup %3817 }
0x19c7   :  { %v2938_v18 = vmul.f32 %v3818_v7, %v2922_v57  ;;  %v2951_v22 = vadd.f32 %v3259_v20, %v2944_v54 }
0x19c9   :  { %v2945_v5 = vmul.f32 %v3258_v16, %v2938_v18 }
0x19cb   :  { %v2952_v21 = vadd.f32 %v3259_v20, %v2945_v5 }
0x19cd   :  { %v2954_v23 = vrot.slane %v2952_v21, 7 }
0x19cf   :  { %v2957_v24 = vsel %vm2956_vm11, %v2951_v22, %v2954_v23 }
0x19d0   :  { %v2958_v25 = vpack.c.bf16 %v2957_v24, %v2957_v24  ;;  %v3089_v31 = vsel %vm201_vm4, %v2957_v24, 0.0 }
0x19d1   :  { %v3091_v35 = vrot.slane %v3089_v31, 6 }
0x19d2   :  { %3628 = vmatmul.mubr.msk.bf16.vlgmr.msra.gmra.mxu1 %vm201_vm4, %v2958_v25 }
0x19d3   :  { %3635 = vmatprep.mubr.msk.bf16.mxu1 %vm3894_vm0, %v3893_v1  ;;  %3632 = vmatpush3.bf16.msra.mxu1 %v3725_v63 }
0x19d4   :  { %3633 = vmatprep.subr.bf16.mxu1 %v3893_v1  ;;  %v3264_v1 = vld [vmem:[%s4555_s9 + $0x17] ss:$0 sm:$0xff] }
0x19d7   :  { %3634 = vmatpush3.bf16.msra.mxu1 %v3726_v26 }
0x1a92   :  { %v3017_v59 = vpop.f32.mrf.mxu1 }
0x1a93   :  { %v3018_v3 = vadd.f32 %v3260_v48, %v3017_v59 }
0x1a94   :  { %v3629_v27 = vpop.f32.mrf.mxu1 }
0x1a95   :  { %3819 = vtanh.f32 %v3018_v3 }
0x1a96   :  { %v3020_v17 = vpop.f32.mrf.mxu1 }
0x1a98   :  { %v3630_v28 = vpop.f32.mrf.mxu1 }
0x1aa2   :  { %v3820_v29 = vpop.eup %3819 }
0x1aa3   :  { %v3024_v30 = vpack.c.bf16 %v3820_v29, %v3820_v29 }
0x1aa5   :  { %3636 = vmatmul.mubr.msk.bf16.vlgmr.msra.gmra.mxu1 %vm201_vm4, %v3024_v30 }
0x1b65   :  { %v3083_v32 = vpop.f32.mrf.mxu1 }
0x1b66   :  { %v3084_v33 = vadd.f32 %v3264_v1, %v3083_v32 }
0x1b67   :  { %v3637_v36 = vpop.f32.mrf.mxu1 }
0x1b68   :  { %v3094_v38 = vsel %vm3093_vm12, %v3084_v33, %v3091_v35 }
0x1b69   :  { %3095 = vst [vmem:[%s4556_s10] sm:$0xf] %v3094_v38  ;;  %v3086_v19 = vpop.f32.mrf.mxu1 }
0x1b6b   :  { %v3638_v39 = vpop.f32.mrf.mxu1 }
0x1b6c   :  { %3100 = vsyncpa [#allocation3], 1 }
0x1b6d   :  { %3101 = vsyncpa [#allocation5], 1 }

</bundles_post_ra>
